<compile_context>
chip_gen: v6e
topology: v6e:2x2x1
jax: 0.10.0
libtpu: 0.0.40
codegen_flags: <defaults>
</compile_context>

<pallas_src>
import jax
import jax.numpy as jnp
import numpy as np
from jax.experimental import pallas as pl
from jax.experimental.pallas import tpu as pltpu

EPS = 1e-5


# --------------------------------------------------------------------------- #
# Kernels
# --------------------------------------------------------------------------- #
def _make_stats_kernel():
    """Per-block channel sum / sum-of-squares (one-pass BN statistics)."""
    def kernel(x_ref, s_ref):
        x = x_ref[...].astype(jnp.float32)                      # (Nb, C, HW)
        s_ref[:, :, 0:1] = jnp.sum(x, axis=(0, 2), keepdims=True)
        s_ref[:, :, 1:2] = jnp.sum(x * x, axis=(0, 2), keepdims=True)
    return kernel


def _make_bn_conv_kernel(Nb, C, Co, H, W, emit_stats):
    """BN (folded scale/shift) -> ReLU -> 3x3 conv (pad 1) for a block of Nb images.

    emit_stats=True  (pass B): writes conv output in bf16 + per-block sum/sumsq.
    emit_stats=False (pass C): adds the residual and writes f32 output.
    """
    HW = H * W
    off0 = W + 1                       # activation offset inside the flat pad buffer
    L = HW + 2 * (W + 1)               # flat zero-padded length

    def kernel(*refs):
        if emit_stats:
            (x_ref, scale_ref, shift_ref, w_ref, b_ref, m_ref,
             o_ref, s_ref, pad_ref, col_ref) = refs
        else:
            (x_ref, res_ref, scale_ref, shift_ref, w_ref, b_ref, m_ref,
             o_ref, pad_ref, col_ref) = refs

        scale = scale_ref[...]                                   # (C, 1)   f32
        shift = shift_ref[...]                                   # (C, 1)   f32
        w = w_ref[...]                                           # (Co, 9C) bf16
        bias = b_ref[...]                                        # (Co, 1)  f32
        masks = m_ref[...]                                       # (2, HW)  bf16 {0,1}

        # Zero only the halo ends of the flat pad buffer, once per grid step
        # (the interior is fully overwritten for every image, so this stays valid).
        pad_ref[:, 0:off0] = jnp.zeros((C, off0), jnp.bfloat16)
        pad_ref[:, off0 + HW:L] = jnp.zeros((C, L - off0 - HW), jnp.bfloat16)

        if emit_stats:
            ssum = jnp.zeros((Co, 1), jnp.float32)
            ssq = jnp.zeros((Co, 1), jnp.float32)

        for n in range(Nb):
            # ---- BN (folded per-channel scale/shift, f32) + ReLU, one bf16 cast ----
            xa = x_ref[n].astype(jnp.float32)                    # (C, HW)
            a = jnp.maximum(xa * scale + shift, 0.0).astype(jnp.bfloat16)
            pad_ref[:, off0:off0 + HW] = a

            # ---- im2col: 9 shifted taps = contiguous lane-slices of pad_ref ----
            # vertical out-of-range reads hit the zeroed halo; only the two
            # horizontal-wrap columns (x==0 for dx=-1, x==W-1 for dx=+1) are masked.
            for ky in range(3):
                for kx in range(3):
                    start = off0 + (ky - 1) * W + (kx - 1)
                    tap = pad_ref[:, start:start + HW]           # (C, HW) bf16
                    if kx == 0:
                        tap = tap * masks[0:1, :]
                    elif kx == 2:
                        tap = tap * masks[1:2, :]
                    t = ky * 3 + kx
                    col_ref[t * C:(t + 1) * C, :] = tap

            # ---- single MXU matmul: (Co, 9C) @ (9C, HW), f32 accumulation ----
            # TODO(synk): for large C/Co (e.g. 256) tile this over Co / spatial rows
            # and accumulate into a f32 VMEM scratch so the live values fit the vreg file.
            acc = jnp.dot(w, col_ref[...],
                          preferred_element_type=jnp.float32) + bias      # (Co, HW)

            if emit_stats:
                y = acc.astype(jnp.bfloat16)
                o_ref[n] = y                                     # y1 stored in bf16
                yf = y.astype(jnp.float32)                       # stats of what we store
                ssum = ssum + jnp.sum(yf, axis=1, keepdims=True)
                ssq = ssq + jnp.sum(yf * yf, axis=1, keepdims=True)
            else:
                o_ref[n] = (acc + res_ref[n].astype(jnp.float32)).astype(o_ref.dtype)

        if emit_stats:
            s_ref[:, :, 0:1] = ssum.reshape(1, Co, 1)
            s_ref[:, :, 1:2] = ssq.reshape(1, Co, 1)

    return kernel


# --------------------------------------------------------------------------- #
# Wrapper
# --------------------------------------------------------------------------- #
def _pick_block_images(N, per_image_bytes, target_bytes=512 * 1024):
    """Largest divisor of N whose block stays ~target and keeps >= 2 grid steps."""
    best = 1
    for nb in range(1, N + 1):
        if (N % nb == 0 and nb * per_image_bytes <= target_bytes
                and (N // nb) >= min(N, 2)):
            best = nb
    return best


def _vmem_limit_bytes(nb, C, Co, H, W):
    """Scoped-VMEM budget from the real per-step footprint, capped per generation."""
    HW = H * W
    L = HW + 2 * (W + 1)
    tiles = nb * HW * (C * 4 + Co * 2 + Co * 4 + C * 4)      # x, y1(bf16), out, residual
    scratch = (C + Co) * L * 2 + 9 * (C + Co) * HW * 2
    consts = 9 * Co * max(C, Co) * 2 + 8 * max(C, Co) * 4
    need = 2 * tiles + scratch + consts                      # double-buffered tiles
    try:
        phys = int(getattr(pltpu.get_tpu_info(), "vmem_capacity_bytes", 64 * 2 ** 20))
    except Exception:
        phys = 64 * 2 ** 20                                  # v7x per-TC size as fallback
    cap = int(phys * 0.85)                                   # headroom for compiler scratch
    return int(min(max(4 * need, 16 * 2 ** 20), cap))


def resunit_forward(x_nchw, params):
    """ResUnit forward (training-mode BN). x_nchw: (N, C, H, W) f32 -> same shape."""
    N, C, H, W = x_nchw.shape
    HW = H * W
    Co = params["conv2_w"].shape[0]
    assert C == Co, "residual connection requires in_channels == out_channels"

    # NCHW is already channels-in-sublanes / spatial-in-lanes: just flatten H,W (free).
    x = x_nchw.reshape(N, C, HW).astype(jnp.float32)

    # conv weights: torch OIHW -> (Co, kh, kw, Cin) -> (Co, 9*Cin); bf16 MXU operands.
    w1 = jnp.transpose(params["conv1_w"], (0, 2, 3, 1)).reshape(Co, 9 * C).astype(jnp.bfloat16)
    w2 = jnp.transpose(params["conv2_w"], (0, 2, 3, 1)).reshape(Co, 9 * Co).astype(jnp.bfloat16)
    b1 = params["conv1_b"].reshape(Co, 1).astype(jnp.float32)
    b2 = params["conv2_b"].reshape(Co, 1).astype(jnp.float32)

    # 0/1 masks for the two horizontal-wrap columns (precomputed: no in-kernel iota/mod).
    colx = np.arange(HW) % W
    edge_mask = jnp.asarray(np.stack([colx > 0, colx < W - 1]).astype(np.float32),
                            dtype=jnp.bfloat16)              # (2, HW)

    nb = _pick_block_images(N, C * HW * 4)
    G = N // nb
    cnt = float(N * HW)

    cparams = pltpu.CompilerParams(
        dimension_semantics=("parallel",),                    # shard blocks across TCs
        vmem_limit_bytes=_vmem_limit_bytes(nb, C, Co, H, W))

    img_spec = lambda ch: pl.BlockSpec((nb, ch, HW), lambda g: (g, 0, 0))
    stat_spec = lambda ch: pl.BlockSpec((1, ch, 2), lambda g: (g, 0, 0))
    full2d = lambda r, c: pl.BlockSpec((r, c), lambda g: (0, 0))

    def fold_bn(stats, gamma, beta):
        """(G, C, 2) per-block partials -> folded per-channel scale/shift, (C, 1)."""
        s = jnp.sum(stats, axis=0)                            # tiny (C, 2) reduce
        mean = s[:, 0] / cnt
        var = jnp.maximum(s[:, 1] / cnt - mean * mean, 0.0)   # biased (training) var
        inv = gamma * jax.lax.rsqrt(var + EPS)
        return (inv.reshape(-1, 1).astype(jnp.float32),
                (beta - mean * inv).reshape(-1, 1).astype(jnp.float32))

    # ---- pass A: BN1 batch statistics of x ----
    stats1 = pl.pallas_call(
        _make_stats_kernel(),
        out_shape=jax.ShapeDtypeStruct((G, C, 2), jnp.float32),
        grid=(G,),
        in_specs=[img_spec(C)],
        out_specs=stat_spec(C),
        compiler_params=cparams,
    )(x)
    scale1, shift1 = fold_bn(stats1, params["bn1_g"], params["bn1_b"])

    # ---- pass B: BN1 + ReLU + conv1 (y1 stored bf16), fused BN2 stat partials ----
    y1, stats2 = pl.pallas_call(
        _make_bn_conv_kernel(nb, C, Co, H, W, emit_stats=True),
        out_shape=(jax.ShapeDtypeStruct((N, Co, HW), jnp.bfloat16),
                   jax.ShapeDtypeStruct((G, Co, 2), jnp.float32)),
        grid=(G,),
        in_specs=[img_spec(C), full2d(C, 1), full2d(C, 1),
                  full2d(Co, 9 * C), full2d(Co, 1), full2d(2, HW)],
        out_specs=(img_spec(Co), stat_spec(Co)),
        scratch_shapes=[pltpu.VMEM((C, HW + 2 * (W + 1)), jnp.bfloat16),
                        pltpu.VMEM((9 * C, HW), jnp.bfloat16)],
        compiler_params=cparams,
    )(x, scale1, shift1, w1, b1, edge_mask)
    scale2, shift2 = fold_bn(stats2, params["bn2_g"], params["bn2_b"])

    # ---- pass C: BN2 + ReLU + conv2 + residual (f32 NCHW output, no transpose) ----
    out = pl.pallas_call(
        _make_bn_conv_kernel(nb, Co, Co, H, W, emit_stats=False),
        out_shape=jax.ShapeDtypeStruct((N, Co, HW), jnp.float32),
        grid=(G,),
        in_specs=[img_spec(Co), img_spec(C), full2d(Co, 1), full2d(Co, 1),
                  full2d(Co, 9 * Co), full2d(Co, 1), full2d(2, HW)],
        out_specs=img_spec(Co),
        scratch_shapes=[pltpu.VMEM((Co, HW + 2 * (W + 1)), jnp.bfloat16),
                        pltpu.VMEM((9 * Co, HW), jnp.bfloat16)],
        compiler_params=cparams,
    )(y1, x, scale2, shift2, w2, b2, edge_mask)

    return out.reshape(N, Co, H, W)


# --------------------------------------------------------------------------- #
# Pure-JAX reference (matches the PyTorch module in training mode)
# --------------------------------------------------------------------------- #
def reference_forward(x_nchw, p):
    def bn(x, g, b):
        mu = jnp.mean(x, axis=(0, 2, 3), keepdims=True)
        var = jnp.mean((x - mu) ** 2, axis=(0, 2, 3), keepdims=True)
        return (x - mu) / jnp.sqrt(var + EPS) * g.reshape(1, -1, 1, 1) + b.reshape(1, -1, 1, 1)

    def conv(x, w, b):
        y = jax.lax.conv_general_dilated(
            x, w, window_strides=(1, 1), padding=((1, 1), (1, 1)),
            dimension_numbers=("NCHW", "OIHW", "NCHW"))
        return y + b.reshape(1, -1, 1, 1)

    z = jax.nn.relu(bn(x_nchw, p["bn1_g"], p["bn1_b"]))
    z = conv(z, p["conv1_w"], p["conv1_b"])
    z = jax.nn.relu(bn(z, p["bn2_g"], p["bn2_b"]))
    z = conv(z, p["conv2_w"], p["conv2_b"])
    return z + x_nchw


def make_params(key, c_in, c_out):
    ks = jax.random.split(key, 8)
    return {
        "bn1_g": 1.0 + 0.1 * jax.random.normal(ks[0], (c_in,), jnp.float32),
        "bn1_b": 0.1 * jax.random.normal(ks[1], (c_in,), jnp.float32),
        "conv1_w": 0.1 * jax.random.normal(ks[2], (c_out, c_in, 3, 3), jnp.float32),
        "conv1_b": 0.1 * jax.random.normal(ks[3], (c_out,), jnp.float32),
        "bn2_g": 1.0 + 0.1 * jax.random.normal(ks[4], (c_out,), jnp.float32),
        "bn2_b": 0.1 * jax.random.normal(ks[5], (c_out,), jnp.float32),
        "conv2_w": 0.1 * jax.random.normal(ks[6], (c_out, c_out, 3, 3), jnp.float32),
        "conv2_b": 0.1 * jax.random.normal(ks[7], (c_out,), jnp.float32),
    }


if __name__ == "__main__":
    N, C, H, W = 2, 8, 16, 16          # residual requires in_channels == out_channels
    key = jax.random.PRNGKey(0)
    kx, kp = jax.random.split(key)
    x = jax.random.normal(kx, (N, C, H, W), jnp.float32)
    params = make_params(kp, C, C)

    out = jax.block_until_ready(jax.jit(resunit_forward)(x, params))
    ref = jax.block_until_ready(reference_forward(x, params))

    # bf16 MXU operands (f32 accumulation) + bf16 y1 per the perf review ->
    # tolerance 2e-2; any structural bug would show errors >> 0.1.
    np.testing.assert_allclose(np.asarray(out), np.asarray(ref), rtol=2e-2, atol=2e-2)

    print("KERNEL_OK")
</pallas_src>

<mosaic_0001>
module attributes {stable_mosaic.version = 11 : i64} {
  func.func @kernel(%arg0: i32, %arg1: memref<1x8x256xf32, #tpu.memory_space<vmem>>, %arg2: memref<1x8x2xf32, #tpu.memory_space<vmem>>) attributes {dimension_semantics = [#tpu.dimension_semantics<parallel>], iteration_bounds = array<i64: 2>, scalar_prefetch = 0 : i64, scratch_operands = 0 : i64, tpu.core_type = #tpu.core_type<tc>, window_params = [{transform_indices = @transform_0, window_bounds = array<i64: 1, 8, 256>}, {transform_indices = @transform_1, window_bounds = array<i64: 1, 8, 2>}]} {
    %c0 = arith.constant 0 : index
    %c0_0 = arith.constant 0 : index
    %c0_1 = arith.constant 0 : index
    %0 = vector.load %arg1[%c0, %c0_0, %c0_1] : memref<1x8x256xf32, #tpu.memory_space<vmem>>, vector<1x8x256xf32>
    %cst = arith.constant dense<0.000000e+00> : vector<8xf32>
    %1 = vector.multi_reduction <add>, %0, %cst [0, 2] : vector<1x8x256xf32> to vector<8xf32>
    %2 = vector.shape_cast %1 : vector<8xf32> to vector<1x8x1xf32>
    %c0_2 = arith.constant 0 : index
    %c0_3 = arith.constant 0 : index
    %c0_4 = arith.constant 0 : index
    %3 = vector.load %arg2[%c0_2, %c0_3, %c0_4] : memref<1x8x2xf32, #tpu.memory_space<vmem>>, vector<1x8x1xf32>
    tpu.vector_store %arg2[%c0_2, %c0_3, %c0_4], %2 {strides = array<i32>} : memref<1x8x2xf32, #tpu.memory_space<vmem>>, vector<1x8x1xf32>,
    %4 = arith.mulf %0, %0 : vector<1x8x256xf32>
    %cst_5 = arith.constant dense<0.000000e+00> : vector<8xf32>
    %5 = vector.multi_reduction <add>, %4, %cst_5 [0, 2] : vector<1x8x256xf32> to vector<8xf32>
    %6 = vector.shape_cast %5 : vector<8xf32> to vector<1x8x1xf32>
    %c0_6 = arith.constant 0 : index
    %c0_7 = arith.constant 0 : index
    %c1 = arith.constant 1 : index
    %7 = vector.load %arg2[%c0_6, %c0_7, %c1] : memref<1x8x2xf32, #tpu.memory_space<vmem>>, vector<1x8x1xf32>
    tpu.vector_store %arg2[%c0_6, %c0_7, %c1], %6 {strides = array<i32>} : memref<1x8x2xf32, #tpu.memory_space<vmem>>, vector<1x8x1xf32>,
    return
  }
  func.func @transform_0(%arg0: i32) -> (i32, i32, i32) {
    %c0_i32 = arith.constant 0 : i32
    %c0_i32_0 = arith.constant 0 : i32
    %c0_i32_1 = arith.constant 0 : i32
    return %arg0, %c0_i32, %c0_i32_0 : i32, i32, i32
  }
  func.func @transform_1(%arg0: i32) -> (i32, i32, i32) {
    %c0_i32 = arith.constant 0 : i32
    %c0_i32_0 = arith.constant 0 : i32
    %c0_i32_1 = arith.constant 0 : i32
    return %arg0, %c0_i32, %c0_i32_0 : i32, i32, i32
  }
}

module attributes {stable_mosaic.version = 11 : i64} {
  func.func @kernel(%arg0: i32, %arg1: memref<1x8x256xf32, #tpu.memory_space<vmem>>, %arg2: memref<8x1xf32, #tpu.memory_space<vmem>>, %arg3: memref<8x1xf32, #tpu.memory_space<vmem>>, %arg4: memref<8x72xbf16, #tpu.memory_space<vmem>>, %arg5: memref<8x1xf32, #tpu.memory_space<vmem>>, %arg6: memref<2x256xbf16, #tpu.memory_space<vmem>>, %arg7: memref<1x8x256xbf16, #tpu.memory_space<vmem>>, %arg8: memref<1x8x2xf32, #tpu.memory_space<vmem>>, %arg9: memref<8x290xbf16, #tpu.memory_space<vmem>>, %arg10: memref<72x256xbf16, #tpu.memory_space<vmem>>) attributes {dimension_semantics = [#tpu.dimension_semantics<parallel>], iteration_bounds = array<i64: 2>, scalar_prefetch = 0 : i64, scratch_operands = 2 : i64, tpu.core_type = #tpu.core_type<tc>, window_params = [{transform_indices = @transform_0, window_bounds = array<i64: 1, 8, 256>}, {pipeline_mode = #tpu.pipeline_mode<synchronous>, transform_indices = @transform_1, window_bounds = array<i64: 8, 1>}, {pipeline_mode = #tpu.pipeline_mode<synchronous>, transform_indices = @transform_2, window_bounds = array<i64: 8, 1>}, {pipeline_mode = #tpu.pipeline_mode<synchronous>, transform_indices = @transform_3, window_bounds = array<i64: 8, 72>}, {pipeline_mode = #tpu.pipeline_mode<synchronous>, transform_indices = @transform_4, window_bounds = array<i64: 8, 1>}, {pipeline_mode = #tpu.pipeline_mode<synchronous>, transform_indices = @transform_5, window_bounds = array<i64: 2, 256>}, {transform_indices = @transform_6, window_bounds = array<i64: 1, 8, 256>}, {transform_indices = @transform_7, window_bounds = array<i64: 1, 8, 2>}]} {
    %c0 = arith.constant 0 : index
    %c0_0 = arith.constant 0 : index
    %0 = vector.load %arg2[%c0, %c0_0] : memref<8x1xf32, #tpu.memory_space<vmem>>, vector<8x1xf32>
    %c0_1 = arith.constant 0 : index
    %c0_2 = arith.constant 0 : index
    %1 = vector.load %arg3[%c0_1, %c0_2] : memref<8x1xf32, #tpu.memory_space<vmem>>, vector<8x1xf32>
    %c0_3 = arith.constant 0 : index
    %c0_4 = arith.constant 0 : index
    %2 = vector.load %arg4[%c0_3, %c0_4] : memref<8x72xbf16, #tpu.memory_space<vmem>>, vector<8x72xbf16>
    %c0_5 = arith.constant 0 : index
    %c0_6 = arith.constant 0 : index
    %3 = vector.load %arg5[%c0_5, %c0_6] : memref<8x1xf32, #tpu.memory_space<vmem>>, vector<8x1xf32>
    %c0_7 = arith.constant 0 : index
    %c0_8 = arith.constant 0 : index
    %4 = vector.load %arg6[%c0_7, %c0_8] : memref<2x256xbf16, #tpu.memory_space<vmem>>, vector<2x256xbf16>
    %cst = arith.constant 0.000000e+00 : bf16
    %5 = vector.broadcast %cst : bf16 to vector<8x17xbf16>
    %c0_9 = arith.constant 0 : index
    %c0_10 = arith.constant 0 : index
    %6 = vector.load %arg9[%c0_9, %c0_10] : memref<8x290xbf16, #tpu.memory_space<vmem>>, vector<8x17xbf16>
    tpu.vector_store %arg9[%c0_9, %c0_10], %5 {strides = array<i32>} : memref<8x290xbf16, #tpu.memory_space<vmem>>, vector<8x17xbf16>,
    %cst_11 = arith.constant 0.000000e+00 : bf16
    %7 = vector.broadcast %cst_11 : bf16 to vector<8x17xbf16>
    %c0_12 = arith.constant 0 : index
    %c273 = arith.constant 273 : index
    %8 = vector.load %arg9[%c0_12, %c273] : memref<8x290xbf16, #tpu.memory_space<vmem>>, vector<8x17xbf16>
    tpu.vector_store %arg9[%c0_12, %c273], %7 {strides = array<i32>} : memref<8x290xbf16, #tpu.memory_space<vmem>>, vector<8x17xbf16>,
    %cst_13 = arith.constant 0.000000e+00 : f32
    %9 = vector.broadcast %cst_13 : f32 to vector<8x1xf32>
    %cst_14 = arith.constant 0.000000e+00 : f32
    %10 = vector.broadcast %cst_14 : f32 to vector<8x1xf32>
    %c0_15 = arith.constant 0 : index
    %c0_16 = arith.constant 0 : index
    %c0_17 = arith.constant 0 : index
    %11 = vector.load %arg1[%c0_15, %c0_16, %c0_17] : memref<1x8x256xf32, #tpu.memory_space<vmem>>, vector<1x8x256xf32>
    %12 = vector.shape_cast %11 : vector<1x8x256xf32> to vector<8x256xf32>
    %13 = vector.broadcast %0 : vector<8x1xf32> to vector<8x256xf32>
    %14 = arith.mulf %12, %13 : vector<8x256xf32>
    %15 = vector.broadcast %1 : vector<8x1xf32> to vector<8x256xf32>
    %16 = arith.addf %14, %15 : vector<8x256xf32>
    %cst_18 = arith.constant 0.000000e+00 : f32
    %17 = vector.broadcast %cst_18 : f32 to vector<8x256xf32>
    %18 = arith.maximumf %16, %17 : vector<8x256xf32>
    %19 = arith.truncf %18 : vector<8x256xf32> to vector<8x256xbf16>
    %c0_19 = arith.constant 0 : index
    %c17 = arith.constant 17 : index
    %20 = vector.load %arg9[%c0_19, %c17] : memref<8x290xbf16, #tpu.memory_space<vmem>>, vector<8x256xbf16>
    tpu.vector_store %arg9[%c0_19, %c17], %19 {strides = array<i32>} : memref<8x290xbf16, #tpu.memory_space<vmem>>, vector<8x256xbf16>,
    %c0_20 = arith.constant 0 : index
    %c0_21 = arith.constant 0 : index
    %21 = vector.load %arg9[%c0_20, %c0_21] : memref<8x290xbf16, #tpu.memory_space<vmem>>, vector<8x256xbf16>
    %22 = vector.extract_strided_slice %4 {offsets = [0, 0], sizes = [1, 256], strides = [1, 1]} : vector<2x256xbf16> to vector<1x256xbf16>
    %23 = vector.broadcast %22 : vector<1x256xbf16> to vector<8x256xbf16>
    %24 = arith.mulf %21, %23 : vector<8x256xbf16>
    %c0_22 = arith.constant 0 : index
    %c0_23 = arith.constant 0 : index
    %25 = vector.load %arg10[%c0_22, %c0_23] : memref<72x256xbf16, #tpu.memory_space<vmem>>, vector<8x256xbf16>
    tpu.vector_store %arg10[%c0_22, %c0_23], %24 {strides = array<i32>} : memref<72x256xbf16, #tpu.memory_space<vmem>>, vector<8x256xbf16>,
    %c0_24 = arith.constant 0 : index
    %c1 = arith.constant 1 : index
    %26 = vector.load %arg9[%c0_24, %c1] : memref<8x290xbf16, #tpu.memory_space<vmem>>, vector<8x256xbf16>
    %c8 = arith.constant 8 : index
    %c0_25 = arith.constant 0 : index
    %27 = vector.load %arg10[%c8, %c0_25] : memref<72x256xbf16, #tpu.memory_space<vmem>>, vector<8x256xbf16>
    tpu.vector_store %arg10[%c8, %c0_25], %26 {strides = array<i32>} : memref<72x256xbf16, #tpu.memory_space<vmem>>, vector<8x256xbf16>,
    %c0_26 = arith.constant 0 : index
    %c2 = arith.constant 2 : index
    %28 = vector.load %arg9[%c0_26, %c2] : memref<8x290xbf16, #tpu.memory_space<vmem>>, vector<8x256xbf16>
    %29 = vector.extract_strided_slice %4 {offsets = [1, 0], sizes = [1, 256], strides = [1, 1]} : vector<2x256xbf16> to vector<1x256xbf16>
    %30 = vector.broadcast %29 : vector<1x256xbf16> to vector<8x256xbf16>
    %31 = arith.mulf %28, %30 : vector<8x256xbf16>
    %c16 = arith.constant 16 : index
    %c0_27 = arith.constant 0 : index
    %32 = vector.load %arg10[%c16, %c0_27] : memref<72x256xbf16, #tpu.memory_space<vmem>>, vector<8x256xbf16>
    tpu.vector_store %arg10[%c16, %c0_27], %31 {strides = array<i32>} : memref<72x256xbf16, #tpu.memory_space<vmem>>, vector<8x256xbf16>,
    %c0_28 = arith.constant 0 : index
    %c16_29 = arith.constant 16 : index
    %33 = vector.load %arg9[%c0_28, %c16_29] : memref<8x290xbf16, #tpu.memory_space<vmem>>, vector<8x256xbf16>
    %34 = vector.extract_strided_slice %4 {offsets = [0, 0], sizes = [1, 256], strides = [1, 1]} : vector<2x256xbf16> to vector<1x256xbf16>
    %35 = vector.broadcast %34 : vector<1x256xbf16> to vector<8x256xbf16>
    %36 = arith.mulf %33, %35 : vector<8x256xbf16>
    %c24 = arith.constant 24 : index
    %c0_30 = arith.constant 0 : index
    %37 = vector.load %arg10[%c24, %c0_30] : memref<72x256xbf16, #tpu.memory_space<vmem>>, vector<8x256xbf16>
    tpu.vector_store %arg10[%c24, %c0_30], %36 {strides = array<i32>} : memref<72x256xbf16, #tpu.memory_space<vmem>>, vector<8x256xbf16>,
    %c0_31 = arith.constant 0 : index
    %c17_32 = arith.constant 17 : index
    %38 = vector.load %arg9[%c0_31, %c17_32] : memref<8x290xbf16, #tpu.memory_space<vmem>>, vector<8x256xbf16>
    %c32 = arith.constant 32 : index
    %c0_33 = arith.constant 0 : index
    %39 = vector.load %arg10[%c32, %c0_33] : memref<72x256xbf16, #tpu.memory_space<vmem>>, vector<8x256xbf16>
    tpu.vector_store %arg10[%c32, %c0_33], %38 {strides = array<i32>} : memref<72x256xbf16, #tpu.memory_space<vmem>>, vector<8x256xbf16>,
    %c0_34 = arith.constant 0 : index
    %c18 = arith.constant 18 : index
    %40 = vector.load %arg9[%c0_34, %c18] : memref<8x290xbf16, #tpu.memory_space<vmem>>, vector<8x256xbf16>
    %41 = vector.extract_strided_slice %4 {offsets = [1, 0], sizes = [1, 256], strides = [1, 1]} : vector<2x256xbf16> to vector<1x256xbf16>
    %42 = vector.broadcast %41 : vector<1x256xbf16> to vector<8x256xbf16>
    %43 = arith.mulf %40, %42 : vector<8x256xbf16>
    %c40 = arith.constant 40 : index
    %c0_35 = arith.constant 0 : index
    %44 = vector.load %arg10[%c40, %c0_35] : memref<72x256xbf16, #tpu.memory_space<vmem>>, vector<8x256xbf16>
    tpu.vector_store %arg10[%c40, %c0_35], %43 {strides = array<i32>} : memref<72x256xbf16, #tpu.memory_space<vmem>>, vector<8x256xbf16>,
    %c0_36 = arith.constant 0 : index
    %c32_37 = arith.constant 32 : index
    %45 = vector.load %arg9[%c0_36, %c32_37] : memref<8x290xbf16, #tpu.memory_space<vmem>>, vector<8x256xbf16>
    %46 = vector.extract_strided_slice %4 {offsets = [0, 0], sizes = [1, 256], strides = [1, 1]} : vector<2x256xbf16> to vector<1x256xbf16>
    %47 = vector.broadcast %46 : vector<1x256xbf16> to vector<8x256xbf16>
    %48 = arith.mulf %45, %47 : vector<8x256xbf16>
    %c48 = arith.constant 48 : index
    %c0_38 = arith.constant 0 : index
    %49 = vector.load %arg10[%c48, %c0_38] : memref<72x256xbf16, #tpu.memory_space<vmem>>, vector<8x256xbf16>
    tpu.vector_store %arg10[%c48, %c0_38], %48 {strides = array<i32>} : memref<72x256xbf16, #tpu.memory_space<vmem>>, vector<8x256xbf16>,
    %c0_39 = arith.constant 0 : index
    %c33 = arith.constant 33 : index
    %50 = vector.load %arg9[%c0_39, %c33] : memref<8x290xbf16, #tpu.memory_space<vmem>>, vector<8x256xbf16>
    %c56 = arith.constant 56 : index
    %c0_40 = arith.constant 0 : index
    %51 = vector.load %arg10[%c56, %c0_40] : memref<72x256xbf16, #tpu.memory_space<vmem>>, vector<8x256xbf16>
    tpu.vector_store %arg10[%c56, %c0_40], %50 {strides = array<i32>} : memref<72x256xbf16, #tpu.memory_space<vmem>>, vector<8x256xbf16>,
    %c0_41 = arith.constant 0 : index
    %c34 = arith.constant 34 : index
    %52 = vector.load %arg9[%c0_41, %c34] : memref<8x290xbf16, #tpu.memory_space<vmem>>, vector<8x256xbf16>
    %53 = vector.extract_strided_slice %4 {offsets = [1, 0], sizes = [1, 256], strides = [1, 1]} : vector<2x256xbf16> to vector<1x256xbf16>
    %54 = vector.broadcast %53 : vector<1x256xbf16> to vector<8x256xbf16>
    %55 = arith.mulf %52, %54 : vector<8x256xbf16>
    %c64 = arith.constant 64 : index
    %c0_42 = arith.constant 0 : index
    %56 = vector.load %arg10[%c64, %c0_42] : memref<72x256xbf16, #tpu.memory_space<vmem>>, vector<8x256xbf16>
    tpu.vector_store %arg10[%c64, %c0_42], %55 {strides = array<i32>} : memref<72x256xbf16, #tpu.memory_space<vmem>>, vector<8x256xbf16>,
    %c0_43 = arith.constant 0 : index
    %c0_44 = arith.constant 0 : index
    %57 = vector.load %arg10[%c0_43, %c0_44] : memref<72x256xbf16, #tpu.memory_space<vmem>>, vector<72x256xbf16>
    %cst_45 = arith.constant dense<0.000000e+00> : vector<8x256xf32>
    %58 = tpu.matmul %2, %57, %cst_45 {dimension_numbers = #tpu.dot_dimension_numbers<[1], [0], [0], [1], [0, 0, 1, 1], [], []>} : vector<8x72xbf16>, vector<72x256xbf16>, vector<8x256xf32> -> vector<8x256xf32>
    %59 = vector.broadcast %3 : vector<8x1xf32> to vector<8x256xf32>
    %60 = arith.addf %58, %59 : vector<8x256xf32>
    %61 = arith.truncf %60 : vector<8x256xf32> to vector<8x256xbf16>
    %c0_46 = arith.constant 0 : index
    %c0_47 = arith.constant 0 : index
    %c0_48 = arith.constant 0 : index
    %62 = vector.load %arg7[%c0_46, %c0_47, %c0_48] : memref<1x8x256xbf16, #tpu.memory_space<vmem>>, vector<1x8x256xbf16>
    %63 = vector.shape_cast %62 : vector<1x8x256xbf16> to vector<8x256xbf16>
    %64 = vector.shape_cast %61 : vector<8x256xbf16> to vector<1x8x256xbf16>
    tpu.vector_store %arg7[%c0_46, %c0_47, %c0_48], %64 {strides = array<i32>} : memref<1x8x256xbf16, #tpu.memory_space<vmem>>, vector<1x8x256xbf16>,
    %65 = arith.extf %61 : vector<8x256xbf16> to vector<8x256xf32>
    %cst_49 = arith.constant dense<0.000000e+00> : vector<8xf32>
    %66 = vector.multi_reduction <add>, %65, %cst_49 [1] : vector<8x256xf32> to vector<8xf32>
    %67 = vector.shape_cast %66 : vector<8xf32> to vector<8x1xf32>
    %68 = arith.addf %9, %67 : vector<8x1xf32>
    %69 = arith.mulf %65, %65 : vector<8x256xf32>
    %cst_50 = arith.constant dense<0.000000e+00> : vector<8xf32>
    %70 = vector.multi_reduction <add>, %69, %cst_50 [1] : vector<8x256xf32> to vector<8xf32>
    %71 = vector.shape_cast %70 : vector<8xf32> to vector<8x1xf32>
    %72 = arith.addf %10, %71 : vector<8x1xf32>
    %73 = vector.shape_cast %68 : vector<8x1xf32> to vector<1x8x1xf32>
    %c0_51 = arith.constant 0 : index
    %c0_52 = arith.constant 0 : index
    %c0_53 = arith.constant 0 : index
    %74 = vector.load %arg8[%c0_51, %c0_52, %c0_53] : memref<1x8x2xf32, #tpu.memory_space<vmem>>, vector<1x8x1xf32>
    tpu.vector_store %arg8[%c0_51, %c0_52, %c0_53], %73 {strides = array<i32>} : memref<1x8x2xf32, #tpu.memory_space<vmem>>, vector<1x8x1xf32>,
    %75 = vector.shape_cast %72 : vector<8x1xf32> to vector<1x8x1xf32>
    %c0_54 = arith.constant 0 : index
    %c0_55 = arith.constant 0 : index
    %c1_56 = arith.constant 1 : index
    %76 = vector.load %arg8[%c0_54, %c0_55, %c1_56] : memref<1x8x2xf32, #tpu.memory_space<vmem>>, vector<1x8x1xf32>
    tpu.vector_store %arg8[%c0_54, %c0_55, %c1_56], %75 {strides = array<i32>} : memref<1x8x2xf32, #tpu.memory_space<vmem>>, vector<1x8x1xf32>,
    return
  }
  func.func @transform_0(%arg0: i32) -> (i32, i32, i32) {
    %c0_i32 = arith.constant 0 : i32
    %c0_i32_0 = arith.constant 0 : i32
    %c0_i32_1 = arith.constant 0 : i32
    return %arg0, %c0_i32, %c0_i32_0 : i32, i32, i32
  }
  func.func @transform_1(%arg0: i32) -> (i32, i32) {
    %c0_i32 = arith.constant 0 : i32
    %c0_i32_0 = arith.constant 0 : i32
    %c0_i32_1 = arith.constant 0 : i32
    return %c0_i32, %c0_i32_0 : i32, i32
  }
  func.func @transform_2(%arg0: i32) -> (i32, i32) {
    %c0_i32 = arith.constant 0 : i32
    %c0_i32_0 = arith.constant 0 : i32
    %c0_i32_1 = arith.constant 0 : i32
    return %c0_i32, %c0_i32_0 : i32, i32
  }
  func.func @transform_3(%arg0: i32) -> (i32, i32) {
    %c0_i32 = arith.constant 0 : i32
    %c0_i32_0 = arith.constant 0 : i32
    %c0_i32_1 = arith.constant 0 : i32
    return %c0_i32, %c0_i32_0 : i32, i32
  }
  func.func @transform_4(%arg0: i32) -> (i32, i32) {
    %c0_i32 = arith.constant 0 : i32
    %c0_i32_0 = arith.constant 0 : i32
    %c0_i32_1 = arith.constant 0 : i32
    return %c0_i32, %c0_i32_0 : i32, i32
  }
  func.func @transform_5(%arg0: i32) -> (i32, i32) {
    %c0_i32 = arith.constant 0 : i32
    %c0_i32_0 = arith.constant 0 : i32
    %c0_i32_1 = arith.constant 0 : i32
    return %c0_i32, %c0_i32_0 : i32, i32
  }
  func.func @transform_6(%arg0: i32) -> (i32, i32, i32) {
    %c0_i32 = arith.constant 0 : i32
    %c0_i32_0 = arith.constant 0 : i32
    %c0_i32_1 = arith.constant 0 : i32
    return %arg0, %c0_i32, %c0_i32_0 : i32, i32, i32
  }
  func.func @transform_7(%arg0: i32) -> (i32, i32, i32) {
    %c0_i32 = arith.constant 0 : i32
    %c0_i32_0 = arith.constant 0 : i32
    %c0_i32_1 = arith.constant 0 : i32
    return %arg0, %c0_i32, %c0_i32_0 : i32, i32, i32
  }
}

module attributes {stable_mosaic.version = 11 : i64} {
  func.func @kernel(%arg0: i32, %arg1: memref<1x8x256xbf16, #tpu.memory_space<vmem>>, %arg2: memref<1x8x256xf32, #tpu.memory_space<vmem>>, %arg3: memref<8x1xf32, #tpu.memory_space<vmem>>, %arg4: memref<8x1xf32, #tpu.memory_space<vmem>>, %arg5: memref<8x72xbf16, #tpu.memory_space<vmem>>, %arg6: memref<8x1xf32, #tpu.memory_space<vmem>>, %arg7: memref<2x256xbf16, #tpu.memory_space<vmem>>, %arg8: memref<1x8x256xf32, #tpu.memory_space<vmem>>, %arg9: memref<8x290xbf16, #tpu.memory_space<vmem>>, %arg10: memref<72x256xbf16, #tpu.memory_space<vmem>>) attributes {dimension_semantics = [#tpu.dimension_semantics<parallel>], iteration_bounds = array<i64: 2>, scalar_prefetch = 0 : i64, scratch_operands = 2 : i64, tpu.core_type = #tpu.core_type<tc>, window_params = [{transform_indices = @transform_0, window_bounds = array<i64: 1, 8, 256>}, {transform_indices = @transform_1, window_bounds = array<i64: 1, 8, 256>}, {pipeline_mode = #tpu.pipeline_mode<synchronous>, transform_indices = @transform_2, window_bounds = array<i64: 8, 1>}, {pipeline_mode = #tpu.pipeline_mode<synchronous>, transform_indices = @transform_3, window_bounds = array<i64: 8, 1>}, {pipeline_mode = #tpu.pipeline_mode<synchronous>, transform_indices = @transform_4, window_bounds = array<i64: 8, 72>}, {pipeline_mode = #tpu.pipeline_mode<synchronous>, transform_indices = @transform_5, window_bounds = array<i64: 8, 1>}, {pipeline_mode = #tpu.pipeline_mode<synchronous>, transform_indices = @transform_6, window_bounds = array<i64: 2, 256>}, {transform_indices = @transform_7, window_bounds = array<i64: 1, 8, 256>}]} {
    %c0 = arith.constant 0 : index
    %c0_0 = arith.constant 0 : index
    %0 = vector.load %arg3[%c0, %c0_0] : memref<8x1xf32, #tpu.memory_space<vmem>>, vector<8x1xf32>
    %c0_1 = arith.constant 0 : index
    %c0_2 = arith.constant 0 : index
    %1 = vector.load %arg4[%c0_1, %c0_2] : memref<8x1xf32, #tpu.memory_space<vmem>>, vector<8x1xf32>
    %c0_3 = arith.constant 0 : index
    %c0_4 = arith.constant 0 : index
    %2 = vector.load %arg5[%c0_3, %c0_4] : memref<8x72xbf16, #tpu.memory_space<vmem>>, vector<8x72xbf16>
    %c0_5 = arith.constant 0 : index
    %c0_6 = arith.constant 0 : index
    %3 = vector.load %arg6[%c0_5, %c0_6] : memref<8x1xf32, #tpu.memory_space<vmem>>, vector<8x1xf32>
    %c0_7 = arith.constant 0 : index
    %c0_8 = arith.constant 0 : index
    %4 = vector.load %arg7[%c0_7, %c0_8] : memref<2x256xbf16, #tpu.memory_space<vmem>>, vector<2x256xbf16>
    %cst = arith.constant 0.000000e+00 : bf16
    %5 = vector.broadcast %cst : bf16 to vector<8x17xbf16>
    %c0_9 = arith.constant 0 : index
    %c0_10 = arith.constant 0 : index
    %6 = vector.load %arg9[%c0_9, %c0_10] : memref<8x290xbf16, #tpu.memory_space<vmem>>, vector<8x17xbf16>
    tpu.vector_store %arg9[%c0_9, %c0_10], %5 {strides = array<i32>} : memref<8x290xbf16, #tpu.memory_space<vmem>>, vector<8x17xbf16>,
    %cst_11 = arith.constant 0.000000e+00 : bf16
    %7 = vector.broadcast %cst_11 : bf16 to vector<8x17xbf16>
    %c0_12 = arith.constant 0 : index
    %c273 = arith.constant 273 : index
    %8 = vector.load %arg9[%c0_12, %c273] : memref<8x290xbf16, #tpu.memory_space<vmem>>, vector<8x17xbf16>
    tpu.vector_store %arg9[%c0_12, %c273], %7 {strides = array<i32>} : memref<8x290xbf16, #tpu.memory_space<vmem>>, vector<8x17xbf16>,
    %c0_13 = arith.constant 0 : index
    %c0_14 = arith.constant 0 : index
    %c0_15 = arith.constant 0 : index
    %9 = vector.load %arg1[%c0_13, %c0_14, %c0_15] : memref<1x8x256xbf16, #tpu.memory_space<vmem>>, vector<1x8x256xbf16>
    %10 = vector.shape_cast %9 : vector<1x8x256xbf16> to vector<8x256xbf16>
    %11 = arith.extf %10 : vector<8x256xbf16> to vector<8x256xf32>
    %12 = vector.broadcast %0 : vector<8x1xf32> to vector<8x256xf32>
    %13 = arith.mulf %11, %12 : vector<8x256xf32>
    %14 = vector.broadcast %1 : vector<8x1xf32> to vector<8x256xf32>
    %15 = arith.addf %13, %14 : vector<8x256xf32>
    %cst_16 = arith.constant 0.000000e+00 : f32
    %16 = vector.broadcast %cst_16 : f32 to vector<8x256xf32>
    %17 = arith.maximumf %15, %16 : vector<8x256xf32>
    %18 = arith.truncf %17 : vector<8x256xf32> to vector<8x256xbf16>
    %c0_17 = arith.constant 0 : index
    %c17 = arith.constant 17 : index
    %19 = vector.load %arg9[%c0_17, %c17] : memref<8x290xbf16, #tpu.memory_space<vmem>>, vector<8x256xbf16>
    tpu.vector_store %arg9[%c0_17, %c17], %18 {strides = array<i32>} : memref<8x290xbf16, #tpu.memory_space<vmem>>, vector<8x256xbf16>,
    %c0_18 = arith.constant 0 : index
    %c0_19 = arith.constant 0 : index
    %20 = vector.load %arg9[%c0_18, %c0_19] : memref<8x290xbf16, #tpu.memory_space<vmem>>, vector<8x256xbf16>
    %21 = vector.extract_strided_slice %4 {offsets = [0, 0], sizes = [1, 256], strides = [1, 1]} : vector<2x256xbf16> to vector<1x256xbf16>
    %22 = vector.broadcast %21 : vector<1x256xbf16> to vector<8x256xbf16>
    %23 = arith.mulf %20, %22 : vector<8x256xbf16>
    %c0_20 = arith.constant 0 : index
    %c0_21 = arith.constant 0 : index
    %24 = vector.load %arg10[%c0_20, %c0_21] : memref<72x256xbf16, #tpu.memory_space<vmem>>, vector<8x256xbf16>
    tpu.vector_store %arg10[%c0_20, %c0_21], %23 {strides = array<i32>} : memref<72x256xbf16, #tpu.memory_space<vmem>>, vector<8x256xbf16>,
    %c0_22 = arith.constant 0 : index
    %c1 = arith.constant 1 : index
    %25 = vector.load %arg9[%c0_22, %c1] : memref<8x290xbf16, #tpu.memory_space<vmem>>, vector<8x256xbf16>
    %c8 = arith.constant 8 : index
    %c0_23 = arith.constant 0 : index
    %26 = vector.load %arg10[%c8, %c0_23] : memref<72x256xbf16, #tpu.memory_space<vmem>>, vector<8x256xbf16>
    tpu.vector_store %arg10[%c8, %c0_23], %25 {strides = array<i32>} : memref<72x256xbf16, #tpu.memory_space<vmem>>, vector<8x256xbf16>,
    %c0_24 = arith.constant 0 : index
    %c2 = arith.constant 2 : index
    %27 = vector.load %arg9[%c0_24, %c2] : memref<8x290xbf16, #tpu.memory_space<vmem>>, vector<8x256xbf16>
    %28 = vector.extract_strided_slice %4 {offsets = [1, 0], sizes = [1, 256], strides = [1, 1]} : vector<2x256xbf16> to vector<1x256xbf16>
    %29 = vector.broadcast %28 : vector<1x256xbf16> to vector<8x256xbf16>
    %30 = arith.mulf %27, %29 : vector<8x256xbf16>
    %c16 = arith.constant 16 : index
    %c0_25 = arith.constant 0 : index
    %31 = vector.load %arg10[%c16, %c0_25] : memref<72x256xbf16, #tpu.memory_space<vmem>>, vector<8x256xbf16>
    tpu.vector_store %arg10[%c16, %c0_25], %30 {strides = array<i32>} : memref<72x256xbf16, #tpu.memory_space<vmem>>, vector<8x256xbf16>,
    %c0_26 = arith.constant 0 : index
    %c16_27 = arith.constant 16 : index
    %32 = vector.load %arg9[%c0_26, %c16_27] : memref<8x290xbf16, #tpu.memory_space<vmem>>, vector<8x256xbf16>
    %33 = vector.extract_strided_slice %4 {offsets = [0, 0], sizes = [1, 256], strides = [1, 1]} : vector<2x256xbf16> to vector<1x256xbf16>
    %34 = vector.broadcast %33 : vector<1x256xbf16> to vector<8x256xbf16>
    %35 = arith.mulf %32, %34 : vector<8x256xbf16>
    %c24 = arith.constant 24 : index
    %c0_28 = arith.constant 0 : index
    %36 = vector.load %arg10[%c24, %c0_28] : memref<72x256xbf16, #tpu.memory_space<vmem>>, vector<8x256xbf16>
    tpu.vector_store %arg10[%c24, %c0_28], %35 {strides = array<i32>} : memref<72x256xbf16, #tpu.memory_space<vmem>>, vector<8x256xbf16>,
    %c0_29 = arith.constant 0 : index
    %c17_30 = arith.constant 17 : index
    %37 = vector.load %arg9[%c0_29, %c17_30] : memref<8x290xbf16, #tpu.memory_space<vmem>>, vector<8x256xbf16>
    %c32 = arith.constant 32 : index
    %c0_31 = arith.constant 0 : index
    %38 = vector.load %arg10[%c32, %c0_31] : memref<72x256xbf16, #tpu.memory_space<vmem>>, vector<8x256xbf16>
    tpu.vector_store %arg10[%c32, %c0_31], %37 {strides = array<i32>} : memref<72x256xbf16, #tpu.memory_space<vmem>>, vector<8x256xbf16>,
    %c0_32 = arith.constant 0 : index
    %c18 = arith.constant 18 : index
    %39 = vector.load %arg9[%c0_32, %c18] : memref<8x290xbf16, #tpu.memory_space<vmem>>, vector<8x256xbf16>
    %40 = vector.extract_strided_slice %4 {offsets = [1, 0], sizes = [1, 256], strides = [1, 1]} : vector<2x256xbf16> to vector<1x256xbf16>
    %41 = vector.broadcast %40 : vector<1x256xbf16> to vector<8x256xbf16>
    %42 = arith.mulf %39, %41 : vector<8x256xbf16>
    %c40 = arith.constant 40 : index
    %c0_33 = arith.constant 0 : index
    %43 = vector.load %arg10[%c40, %c0_33] : memref<72x256xbf16, #tpu.memory_space<vmem>>, vector<8x256xbf16>
    tpu.vector_store %arg10[%c40, %c0_33], %42 {strides = array<i32>} : memref<72x256xbf16, #tpu.memory_space<vmem>>, vector<8x256xbf16>,
    %c0_34 = arith.constant 0 : index
    %c32_35 = arith.constant 32 : index
    %44 = vector.load %arg9[%c0_34, %c32_35] : memref<8x290xbf16, #tpu.memory_space<vmem>>, vector<8x256xbf16>
    %45 = vector.extract_strided_slice %4 {offsets = [0, 0], sizes = [1, 256], strides = [1, 1]} : vector<2x256xbf16> to vector<1x256xbf16>
    %46 = vector.broadcast %45 : vector<1x256xbf16> to vector<8x256xbf16>
    %47 = arith.mulf %44, %46 : vector<8x256xbf16>
    %c48 = arith.constant 48 : index
    %c0_36 = arith.constant 0 : index
    %48 = vector.load %arg10[%c48, %c0_36] : memref<72x256xbf16, #tpu.memory_space<vmem>>, vector<8x256xbf16>
    tpu.vector_store %arg10[%c48, %c0_36], %47 {strides = array<i32>} : memref<72x256xbf16, #tpu.memory_space<vmem>>, vector<8x256xbf16>,
    %c0_37 = arith.constant 0 : index
    %c33 = arith.constant 33 : index
    %49 = vector.load %arg9[%c0_37, %c33] : memref<8x290xbf16, #tpu.memory_space<vmem>>, vector<8x256xbf16>
    %c56 = arith.constant 56 : index
    %c0_38 = arith.constant 0 : index
    %50 = vector.load %arg10[%c56, %c0_38] : memref<72x256xbf16, #tpu.memory_space<vmem>>, vector<8x256xbf16>
    tpu.vector_store %arg10[%c56, %c0_38], %49 {strides = array<i32>} : memref<72x256xbf16, #tpu.memory_space<vmem>>, vector<8x256xbf16>,
    %c0_39 = arith.constant 0 : index
    %c34 = arith.constant 34 : index
    %51 = vector.load %arg9[%c0_39, %c34] : memref<8x290xbf16, #tpu.memory_space<vmem>>, vector<8x256xbf16>
    %52 = vector.extract_strided_slice %4 {offsets = [1, 0], sizes = [1, 256], strides = [1, 1]} : vector<2x256xbf16> to vector<1x256xbf16>
    %53 = vector.broadcast %52 : vector<1x256xbf16> to vector<8x256xbf16>
    %54 = arith.mulf %51, %53 : vector<8x256xbf16>
    %c64 = arith.constant 64 : index
    %c0_40 = arith.constant 0 : index
    %55 = vector.load %arg10[%c64, %c0_40] : memref<72x256xbf16, #tpu.memory_space<vmem>>, vector<8x256xbf16>
    tpu.vector_store %arg10[%c64, %c0_40], %54 {strides = array<i32>} : memref<72x256xbf16, #tpu.memory_space<vmem>>, vector<8x256xbf16>,
    %c0_41 = arith.constant 0 : index
    %c0_42 = arith.constant 0 : index
    %56 = vector.load %arg10[%c0_41, %c0_42] : memref<72x256xbf16, #tpu.memory_space<vmem>>, vector<72x256xbf16>
    %cst_43 = arith.constant dense<0.000000e+00> : vector<8x256xf32>
    %57 = tpu.matmul %2, %56, %cst_43 {dimension_numbers = #tpu.dot_dimension_numbers<[1], [0], [0], [1], [0, 0, 1, 1], [], []>} : vector<8x72xbf16>, vector<72x256xbf16>, vector<8x256xf32> -> vector<8x256xf32>
    %58 = vector.broadcast %3 : vector<8x1xf32> to vector<8x256xf32>
    %59 = arith.addf %57, %58 : vector<8x256xf32>
    %c0_44 = arith.constant 0 : index
    %c0_45 = arith.constant 0 : index
    %c0_46 = arith.constant 0 : index
    %60 = vector.load %arg2[%c0_44, %c0_45, %c0_46] : memref<1x8x256xf32, #tpu.memory_space<vmem>>, vector<1x8x256xf32>
    %61 = vector.shape_cast %60 : vector<1x8x256xf32> to vector<8x256xf32>
    %62 = arith.addf %59, %61 : vector<8x256xf32>
    %c0_47 = arith.constant 0 : index
    %c0_48 = arith.constant 0 : index
    %c0_49 = arith.constant 0 : index
    %63 = vector.load %arg8[%c0_47, %c0_48, %c0_49] : memref<1x8x256xf32, #tpu.memory_space<vmem>>, vector<1x8x256xf32>
    %64 = vector.shape_cast %63 : vector<1x8x256xf32> to vector<8x256xf32>
    %65 = vector.shape_cast %62 : vector<8x256xf32> to vector<1x8x256xf32>
    tpu.vector_store %arg8[%c0_47, %c0_48, %c0_49], %65 {strides = array<i32>} : memref<1x8x256xf32, #tpu.memory_space<vmem>>, vector<1x8x256xf32>,
    return
  }
  func.func @transform_0(%arg0: i32) -> (i32, i32, i32) {
    %c0_i32 = arith.constant 0 : i32
    %c0_i32_0 = arith.constant 0 : i32
    %c0_i32_1 = arith.constant 0 : i32
    return %arg0, %c0_i32, %c0_i32_0 : i32, i32, i32
  }
  func.func @transform_1(%arg0: i32) -> (i32, i32, i32) {
    %c0_i32 = arith.constant 0 : i32
    %c0_i32_0 = arith.constant 0 : i32
    %c0_i32_1 = arith.constant 0 : i32
    return %arg0, %c0_i32, %c0_i32_0 : i32, i32, i32
  }
  func.func @transform_2(%arg0: i32) -> (i32, i32) {
    %c0_i32 = arith.constant 0 : i32
    %c0_i32_0 = arith.constant 0 : i32
    %c0_i32_1 = arith.constant 0 : i32
    return %c0_i32, %c0_i32_0 : i32, i32
  }
  func.func @transform_3(%arg0: i32) -> (i32, i32) {
    %c0_i32 = arith.constant 0 : i32
    %c0_i32_0 = arith.constant 0 : i32
    %c0_i32_1 = arith.constant 0 : i32
    return %c0_i32, %c0_i32_0 : i32, i32
  }
  func.func @transform_4(%arg0: i32) -> (i32, i32) {
    %c0_i32 = arith.constant 0 : i32
    %c0_i32_0 = arith.constant 0 : i32
    %c0_i32_1 = arith.constant 0 : i32
    return %c0_i32, %c0_i32_0 : i32, i32
  }
  func.func @transform_5(%arg0: i32) -> (i32, i32) {
    %c0_i32 = arith.constant 0 : i32
    %c0_i32_0 = arith.constant 0 : i32
    %c0_i32_1 = arith.constant 0 : i32
    return %c0_i32, %c0_i32_0 : i32, i32
  }
  func.func @transform_6(%arg0: i32) -> (i32, i32) {
    %c0_i32 = arith.constant 0 : i32
    %c0_i32_0 = arith.constant 0 : i32
    %c0_i32_1 = arith.constant 0 : i32
    return %c0_i32, %c0_i32_0 : i32, i32
  }
  func.func @transform_7(%arg0: i32) -> (i32, i32, i32) {
    %c0_i32 = arith.constant 0 : i32
    %c0_i32_0 = arith.constant 0 : i32
    %c0_i32_1 = arith.constant 0 : i32
    return %arg0, %c0_i32, %c0_i32_0 : i32, i32, i32
  }
}

</mosaic_0001>

<bundles_post_ra>
// kernel: resunit_forward.3
= control target key start
LH: loop header
LB: loop body
LE: loop exit
PB: predicated region body
PF: predicated region fallthrough
CT: control target
= control target key end

     0   :  { %s219_s6 = smov 0   ;;  %s236_s0 = inlined_call_operand.vmem [shape: f32[2,8,256], index: 0, kind: input, shape index: {}]   ;;  %s237_s1 = inlined_call_operand.vmem [shape: f32[2,8,2], index: 1, kind: output, shape index: {}]  }
   0x1 LB: > { %s182_s7 = sadd.s32 4294967295, %s207_s6   ;;  %p186_p0 = scmp.ge.s32.totalorder %s207_s6, 1  ;;  %s207_s6 = sphi %s219_s6, %s11_s6  }
   0x2   : > { %p87_p1 = scmp.lt.s32.totalorder %s207_s6, 3 }
   0x4   : > { %p88_p2 = pnand %p186_p0, %p87_p1 }
   0x5   : > { %p106_p3 = scmp.lt.s32.totalorder (!%p88_p2), %s182_s7, 1 }
   0x6   : > { %91 = sbr.rel (%p88_p2) target bundleno = 160 (0xa0), region = 24 }
   0xb   : > { %s239_s7 = smov (!%p106_p3, %s182_s7), 1  ;;  %vm120_vm0 = vcmask 7168   ;;  %vm127_vm1 = vcmask 15368  }
   0xc   : > { %s192_s8 = sshll.u32 %s239_s7, 4  ;;  %s189_s12 = sshll.u32 %s239_s7, 3 }
   0xd   : > { %s110_s11 = scalar_lea.vmem %s236_s0, %s192_s8  ;;  %s114_s15 = scalar_lea.vmem %s237_s1, %s189_s12 }
   0xe   : > { %v115_v0 = vld [vmem:[%s110_s11] sm:$0xff]  ;;  %v116_v1 = vld [vmem:[%s110_s11 + $0x8] sm:$0xff] }
   0xf   : > { %v117_v2 = vadd.f32 %v116_v1, %v115_v0  ;;  %v122_v3 = vmul.f32 %v115_v0, %v115_v0  ;;  %v123_v4 = vmul.f32 %v116_v1, %v116_v1 }
  0x11   : > { %118 = vadd.xlane.f32.xlu0 %v117_v2  ;;  %v124_v5 = vadd.f32 %v123_v4, %v122_v3 }
  0x15   : > { %125 = vadd.xlane.f32.xlu0 %v124_v5 }
  0x9a   : > { %v119_v6 = vpop.xlane.xlu0 %118 }
  0x9b   : > { %121 = vst.msk [vmem:[%s114_s15] sm:$0xff] %vm120_vm0, %v119_v6 }
  0x9e   : > { %v126_v7 = vpop.xlane.xlu0 %125 }
  0x9f   : > { %128 = vst.msk [vmem:[%s114_s15] sm:$0xff] %vm127_vm1, %v126_v7 }
  0xa0 PF: > { %s11_s6 = sadd.s32 1, %s207_s6  }
  0xa1   : > { %p8_p4 = scmp.ge.s32.totalorder %s11_s6, 4  }
  0xa3   :  { %10 = sbr.rel (!%p8_p4) target bundleno = 1 (0x1), region = 54 }

// kernel: resunit_forward.4
= control target key start
LH: loop header
LB: loop body
LE: loop exit
PB: predicated region body
PF: predicated region fallthrough
CT: control target
= control target key end

     0   :  { %s912_s24 = smov 0   ;;  %s986_s0 = inlined_call_operand.vmem [shape: f32[2,8,256], index: 0, kind: input, shape index: {}]   ;;  %s987_s1 = inlined_call_operand.vmem [shape: f32[8,1], index: 1, kind: input, shape index: {}]   ;;  %s988_s2 = inlined_call_operand.vmem [shape: f32[8,1], index: 2, kind: input, shape index: {}]   ;;  %s989_s3 = inlined_call_operand.vmem [shape: bf16[8,72], index: 3, kind: input, shape index: {}]   ;;  %s990_s4 = inlined_call_operand.vmem [shape: f32[8,1], index: 4, kind: input, shape index: {}]   ;;  %s991_s5 = inlined_call_operand.vmem [shape: bf16[2,256], index: 5, kind: input, shape index: {}]   ;;  %s992_s6 = inlined_call_operand.vmem [shape: bf16[2,8,256], index: 6, kind: output, shape index: {0}]   ;;  %s993_s7 = inlined_call_operand.vmem [shape: f32[2,8,2], index: 7, kind: output, shape index: {1}]  }
   0x1 LB: > { %s790_s25 = sadd.s32 4294967295, %s854_s24   ;;  %p794_p0 = scmp.ge.s32.totalorder %s854_s24, 1  ;;  %s854_s24 = sphi %s912_s24, %s18_s24  }
   0x2   : > { %p240_p1 = scmp.lt.s32.totalorder %s854_s24, 3 }
   0x4   : > { %p241_p2 = pnand %p794_p0, %p240_p1 }
   0x5   : > { %s858_s9 = smov (!%p241_p2), 32   ;;  %s859_s10 = smov (!%p241_p2), 2  }
   0x6   : > { %244 = sbr.rel (%p241_p2) target bundleno = 770 (0x302), region = 44  ;;  %p276_p3 = scmp.lt.s32.totalorder (!%p241_p2), %s790_s25, 1 }
   0x7   : > { %s860_s15 = smov (!%p241_p2), 17   ;;  %s861_s16 = smov (!%p241_p2), 34  }
   0x8   : > { %s862_s17 = smov (!%p241_p2), 18   ;;  %s863_s18 = smov (!%p241_p2), 16  }
   0x9   : > { %s864_s19 = smov (!%p241_p2), 95   ;;  %s865_s20 = smov (!%p241_p2), 111  }
   0xa   : > { %s866_s21 = smov (!%p241_p2), 94   ;;  %s867_s22 = smov (!%p241_p2), 96  }
   0xb   : > { %vm298_vm0 = vcmask 273544   ;;  %v291_v0 = vld [vmem:[%s987_s1] sm:$0xff]  ;;  %v350_v1 = vlaneseq  ;;  %v856_v2 = vmov 0   ;;  %v857_v4 = vmov 1966171168   ;;  %s995_s25 = smov (!%p276_p3, %s790_s25), 1 }
   0xc   : > { %847 = vset.pattern.permute.xlu0 %v856_v2  ;;  %299 = vst.msk [vmem:[#allocation2 + $0x8] sm:$0xf] %vm298_vm0, %v856_v2  ;;  %v801_v3 = vld.sshfl [vmem:[%s991_s5] sm:$0x11 pattern:$0x75316420]  ;;  %670 = vmatprep.mubr.bf16.mxu0 %v856_v2  ;;  %v348_v5 = vunpack.c.l.s4 %v857_v4 }
   0xd   : > { %304 = vperm.xlu0 %847, %v291_v0   ;;  %v351_v6 = vshrl.u32 %v350_v1, 7  ;;  %v292_v7 = vld [vmem:[%s988_s2] sm:$0xff]  ;;  %v346_v8 = vcombine.high %v801_v3, %v801_v3  ;;  %vm296_vm1 = vcmask 134144   ;;  %s819_s11 = sshll.u32 %s995_s25, 4  ;;  %vm332_vm2 = vcmask 1043592   ;;  %s868_s23 = smov 110  }
   0xe   : > { %v349_v9 = vunpack.c.0.s8 %v348_v5  ;;  %297 = vst.msk [vmem:[#allocation2] sm:$0xf] %vm296_vm1, %v856_v2  ;;  %s280_s14 = scalar_lea.vmem %s986_s0, %s819_s11  ;;  %vm333_vm3 = vcmask 1047556   ;;  %vm328_vm4 = vcmask 138240   ;;  %vm549_vm6 = vcmask 277504   ;;  %s869_s26 = smov 126  }
   0xf   : > { %v366_v13 = vsub.s32 0, %v351_v6  ;;  %v300_v27 = vld [vmem:[%s280_s14] sm:$0xff]  ;;  %v301_v28 = vld [vmem:[%s280_s14 + $0x8] sm:$0xff]  ;;  %vm334_vm5 = vmor %vm333_vm3, %vm332_vm2  ;;  %vm510_vm7 = vcmask 261120   ;;  %vm486_vm8 = vcmask 146432   ;;  %vm423_vm9 = vcmask 15360  }
  0x10   : > { %v352_v10 = vsub.s32 %v349_v9, %v351_v6  ;;  %vm447_vm10 = vcmask 130048   ;;  %s870_s27 = smov 112   ;;  %s871_s28 = smov 127   ;;  %vm393_vm11 = vcmask 1043456   ;;  %vm564_vm12 = vcmask 769024  }
  0x11   : > { %311 = vperm.xlu0 %847, %v292_v7   ;;  %vm540_vm13 = vcmask 777216   ;;  %vm525_vm14 = vcmask 785408   ;;  %vm477_vm15 = vcmask 908288   ;;  %vm501_vm0 = vcmask 900096  }
  0x12   : > { %v353_v11 = vrot.slane %v801_v3, %v352_v10  ;;  %v360_v12 = vrot.slane %v346_v8, %v352_v10  ;;  %v294_v10 = vld [vmem:[%s990_s4] sm:$0xff]  ;;  %vm462_vm2 = vcmask 916480   ;;  %vm395_vm3 = vcmask 1039360  }
  0x14   : > { %v362_v14 = vpack.i.b16 %v353_v11, %v353_v11  ;;  %v369_v15 = vpack.i.b16 %v360_v12, %v360_v12  ;;  %v401_v16 = vshrl.u32 %v353_v11, 16  ;;  %v408_v17 = vshrl.u32 %v360_v12, 16 }
  0x16   : > { %v367_v18 = vrot.slane %v362_v14, %v366_v13  ;;  %v374_v19 = vrot.slane %v369_v15, %v366_v13  ;;  %v402_v20 = vpack.i.b16 %v401_v16, %v401_v16  ;;  %v409_v21 = vpack.i.b16 %v408_v17, %v408_v17 }
  0x18   : > { %v929_v22 = vcombine.low %v367_v18, %v374_v19  ;;  %v407_v23 = vrot.slane %v402_v20, %v366_v13  ;;  %v414_v24 = vrot.slane %v409_v21, %v366_v13 }
  0x1a   : > { %507 = vrot.lane.b32.xlu0 %v929_v22, %s858_s9  ;;  %v803_v25 = vcombine.low %v407_v23, %v414_v24 }
  0x1e   : > { %420 = vrot.lane.b32.xlu0 %v803_v25, %s859_s10  ;;  %s820_s10 = sshll.u32 %s995_s25, 3 }
  0x1f   : > { %s285_s13 = scalar_lea.vmem %s992_s6, %s820_s10 }
  0x88   : > { %v305_v26 = vpop.permute.xlu0 %304 }
  0x89   : > { %v307_v29 = vmul.f32 %v305_v26, %v300_v27  ;;  %v308_v30 = vmul.f32 %v305_v26, %v301_v28 }
  0x8c   : > { %v312_v31 = vpop.permute.xlu0 %311 }
  0x8d   : > { %v314_v32 = vadd.f32 %v312_v31, %v307_v29  ;;  %v315_v33 = vadd.f32 %v312_v31, %v308_v30 }
  0x8f   : > { %v316_v34 = vmax.f32 %v314_v32, 0.0  ;;  %v317_v35 = vmax.f32 %v315_v33, 0.0 }
  0x90   : > { %v508_v44 = vpop.permute.xlu0 %507 }
  0x91   : > { %v821_v36 = vpack.c.bf16 %v317_v35, %v316_v34  ;;  %v509_v47 = vrot.slane %v508_v44, 4 }
  0x93   : > { %325 = vrot.lane.b32.xlu1 %v821_v36, %s860_s15  ;;  %v511_v53 = vsel %vm510_vm7, %v509_v47, %v508_v44  ;;  %s289_s15 = scalar_lea.vmem %s993_s7, %s820_s10 }
  0x94   : > { %v421_v55 = vpop.permute.xlu0 %420 }
  0x95   : > { %v422_v59 = vrot.slane %v421_v55, 4 }
  0x97   : > { %546 = vrot.lane.b32.xlu1 %v803_v25, %s861_s16  ;;  %v424_v1 = vsel %vm423_vm9, %v422_v59, %v421_v55 }
  0x9b   : > { %483 = vrot.lane.b32.xlu1 %v803_v25, %s862_s17 }
  0x9f   : > { %444 = vrot.lane.b32.xlu1 %v929_v22, %s863_s18 }
 0x105   : > { %v326_v37 = vpop.permute.xlu1 %325 }
 0x106   : > { %v327_v38 = vrot.slane %v326_v37, 4 }
 0x108   : > { %v329_v39 = vsel %vm328_vm4, %v327_v38, %v326_v37  ;;  %336 = vst.msk [vmem:[#allocation2 + $0x8] sm:$0xf] %vm296_vm1, %v327_v38  ;;  %vm438_vm1 = vcmask 1031168   ;;  %vm627_vm4 = vcmask 588800  }
 0x109   : > { %335 = vst.msk [vmem:[#allocation2] sm:$0xff] %vm334_vm5, %v329_v39  ;;  %v547_v41 = vpop.permute.xlu1 %546  ;;  %vm700_vm5 = vcmask 7168  }
 0x10a   : > { %v548_v43 = vrot.slane %v547_v41, 4 }
 0x10c   : > { %v550_v48 = vsel %vm549_vm6, %v548_v43, %v547_v41  ;;  %vm702_vm6 = vcmask 15368  }
 0x10d   : > { %v484_v49 = vpop.permute.xlu1 %483 }
 0x10e   : > { %v485_v54 = vrot.slane %v484_v49, 4 }
 0x10f   : > { %v530_v42 = vld [vmem:[#allocation2 + $0x8] sm:$0xf] }
 0x110   : > { %v945_v40 = vld [vmem:[#allocation2] sm:$0xff]  ;;  %535 = vrot.lane.b32.xlu1 %v530_v42, %s864_s19  ;;  %v545_v45 = vld [vmem:[#allocation2 + $0x8] sm:$0xf]  ;;  %v487_v60 = vsel %vm486_vm8, %v485_v54, %v484_v49 }
 0x111   : > { %533 = vrot.lane.b32.xlu0 %v945_v40, %s864_s19  ;;  %v467_v46 = vld [vmem:[#allocation2 + $0x8] sm:$0xf]  ;;  %v554_v50 = vmul.bf16 %v548_v43, %v545_v45  ;;  %v553_v52 = vmul.bf16 %v550_v48, %v945_v40  ;;  %v514_v57 = vmul.bf16 %v511_v53, %v945_v40  ;;  %v445_v61 = vpop.permute.xlu1 %444  ;;  %v490_v0 = vmul.bf16 %v945_v40, %v487_v60 }
 0x112   : > { %v506_v51 = vld [vmem:[#allocation2 + $0x8] sm:$0xf]  ;;  %v446_v2 = vrot.slane %v445_v61, 4  ;;  %v427_v4 = vmul.bf16 %v945_v40, %v424_v1 }
 0x113   : > { %v515_v56 = vmul.bf16 %v509_v47, %v506_v51  ;;  %v482_v58 = vld [vmem:[#allocation2 + $0x8] sm:$0xf] }
 0x114   : > { %472 = vrot.lane.b32.xlu1 %v467_v46, %s865_s20  ;;  %v491_v62 = vmul.bf16 %v485_v54, %v482_v58  ;;  %v400_v63 = vld [vmem:[#allocation2 + $0x8] sm:$0xf]  ;;  %v448_v5 = vsel %vm447_vm10, %v446_v2, %v445_v61 }
 0x115   : > { %470 = vrot.lane.b32.xlu0 %v945_v40, %s865_s20  ;;  %v428_v3 = vmul.bf16 %v422_v59, %v400_v63  ;;  %v443_v6 = vld [vmem:[#allocation2 + $0x8] sm:$0xf]  ;;  %v451_v8 = vmul.bf16 %v945_v40, %v448_v5 }
 0x116   : > { %v452_v7 = vmul.bf16 %v446_v2, %v443_v6  ;;  %v384_v9 = vld [vmem:[#allocation2 + $0x8] sm:$0xf] }
 0x118   : > { %559 = vrot.lane.b32.xlu1 %v554_v50, %s866_s21 }
 0x119   : > { %557 = vrot.lane.b32.xlu0 %v553_v52, %s866_s21 }
 0x11c   : > { %520 = vrot.lane.b32.xlu1 %v515_v56, %s867_s22 }
 0x11d   : > { %518 = vrot.lane.b32.xlu0 %v514_v57, %s867_s22 }
 0x120   : > { %496 = vrot.lane.b32.xlu1 %v491_v62, %s868_s23 }
 0x121   : > { %494 = vrot.lane.b32.xlu0 %v490_v0, %s868_s23 }
 0x124   : > { %433 = vrot.lane.b32.xlu1 %v428_v3, %s869_s26 }
 0x125   : > { %431 = vrot.lane.b32.xlu0 %v427_v4, %s869_s26  ;;  %v381_v4 = vmul.bf16 %v929_v22, %v945_v40 }
 0x128   : > { %457 = vrot.lane.b32.xlu1 %v452_v7, %s870_s27 }
 0x129   : > { %455 = vrot.lane.b32.xlu0 %v451_v8, %s870_s27 }
 0x12c   : > { %389 = vrot.lane.b32.xlu1 %v384_v9, %s871_s28  ;;  %v293_v9 = vld [vmem:[%s989_s3] sm:$0xf] }
 0x12d   : > { %387 = vrot.lane.b32.xlu0 %v945_v40, %s871_s28 }
 0x131   : > { %579 = vperm.xlu0 %847, %v294_v10  }
 0x182   : > { %v536_v11 = vpop.permute.xlu1 %535 }
 0x183   : > { %v534_v12 = vpop.permute.xlu0 %533  ;;  %v538_v16 = vrot.slane %v536_v11, 4 }
 0x184   : > { %v537_v17 = vrot.slane %v534_v12, 4 }
 0x186   : > { %v473_v13 = vpop.permute.xlu1 %472  ;;  %v539_v24 = vsel %vm393_vm11, %v537_v17, %v538_v16 }
 0x187   : > { %v471_v14 = vpop.permute.xlu0 %470  ;;  %v475_v25 = vrot.slane %v473_v13, 4  ;;  %v541_v36 = vsel %vm540_vm13, %v534_v12, %v539_v24 }
 0x188   : > { %v474_v29 = vrot.slane %v471_v14, 4 }
 0x18a   : > { %v560_v15 = vpop.permute.xlu1 %559  ;;  %v476_v41 = vsel %vm393_vm11, %v474_v29, %v475_v25 }
 0x18b   : > { %v562_v18 = vrot.slane %v560_v15, 4  ;;  %v558_v19 = vpop.permute.xlu0 %557  ;;  %v478_v47 = vsel %vm477_vm15, %v471_v14, %v476_v41 }
 0x18c   : > { %v561_v20 = vrot.slane %v558_v19, 4 }
 0x18e   : > { %v563_v21 = vsel %vm393_vm11, %v561_v20, %v562_v18  ;;  %v521_v23 = vpop.permute.xlu1 %520 }
 0x18f   : > { %v565_v26 = vsel %vm564_vm12, %v558_v19, %v563_v21  ;;  %v523_v27 = vrot.slane %v521_v23, 4  ;;  %v519_v28 = vpop.permute.xlu0 %518 }
 0x190   : > { %v522_v30 = vrot.slane %v519_v28, 4  ;;  %v813_v31 = vcombine.high %v565_v26, %v565_v26  ;;  %v812_v32 = vcombine.low %v565_v26, %v565_v26 }
 0x192   : > { %v524_v33 = vsel %vm393_vm11, %v522_v30, %v523_v27  ;;  %814 = vmatprep.subr.msk.bf16.mxu0 %vm393_vm11, %v813_v31  ;;  %v497_v34 = vpop.permute.xlu1 %496  ;;  %v633_v35 = vsel %vm393_vm11, %v812_v32, 0 }
 0x193   : > { %v526_v37 = vsel %vm525_vm14, %v519_v28, %v524_v33  ;;  %v499_v38 = vrot.slane %v497_v34, 4  ;;  %v495_v39 = vpop.permute.xlu0 %494  ;;  %645 = vmatpush1.bf16.msra.mxu0 %v633_v35 }
 0x194   : > { %v810_v42 = vcombine.low %v526_v37, %v541_v36  ;;  %v811_v43 = vcombine.high %v526_v37, %v541_v36  ;;  %v498_v44 = vrot.slane %v495_v39, 4 }
 0x196   : > { %v500_v45 = vsel %vm393_vm11, %v498_v44, %v499_v38  ;;  %646 = vmatprep.subr.bf16.mxu0 %v811_v43  ;;  %v434_v46 = vpop.permute.xlu1 %433 }
 0x197   : > { %v502_v48 = vsel %vm501_vm0, %v495_v39, %v500_v45  ;;  %v432_v49 = vpop.permute.xlu0 %431  ;;  %647 = vmatpush1.bf16.msra.mxu0 %v810_v42  ;;  %v436_v52 = vrot.slane %v434_v46, 4 }
 0x198   : > { %v808_v50 = vcombine.low %v478_v47, %v502_v48  ;;  %v809_v51 = vcombine.high %v478_v47, %v502_v48  ;;  %v435_v53 = vrot.slane %v432_v49, 4 }
 0x19a   : > { %648 = vmatprep.subr.bf16.mxu0 %v809_v51  ;;  %v458_v54 = vpop.permute.xlu1 %457  ;;  %v437_v57 = vsel %vm393_vm11, %v435_v53, %v436_v52 }
 0x19b   : > { %v460_v55 = vrot.slane %v458_v54, 4  ;;  %v456_v56 = vpop.permute.xlu0 %455  ;;  %649 = vmatpush1.bf16.msra.mxu0 %v808_v50  ;;  %v439_v61 = vsel %vm438_vm1, %v432_v49, %v437_v57 }
 0x19c   : > { %v459_v58 = vrot.slane %v456_v56, 4 }
 0x19e   : > { %v461_v59 = vsel %vm393_vm11, %v459_v58, %v460_v55  ;;  %v390_v60 = vpop.permute.xlu1 %389 }
 0x19f   : > { %v463_v62 = vsel %vm462_vm2, %v456_v56, %v461_v59  ;;  %v392_v63 = vrot.slane %v390_v60, 4  ;;  %v388_v0 = vpop.permute.xlu0 %387 }
 0x1a0   : > { %v806_v1 = vcombine.low %v439_v61, %v463_v62  ;;  %v807_v2 = vcombine.high %v439_v61, %v463_v62  ;;  %v391_v3 = vrot.slane %v388_v0, 4 }
 0x1a2   : > { %v394_v5 = vsel %vm393_vm11, %v391_v3, %v392_v63  ;;  %650 = vmatprep.subr.bf16.mxu0 %v807_v2 }
 0x1a3   : > { %v396_v6 = vsel %vm395_vm3, %v388_v0, %v394_v5  ;;  %651 = vmatpush1.bf16.msra.mxu0 %v806_v1 }
 0x1a4   : > { %v804_v7 = vcombine.low %v381_v4, %v396_v6  ;;  %v805_v8 = vcombine.high %v381_v4, %v396_v6 }
 0x1a6   : > { %652 = vmatprep.subr.bf16.mxu0 %v805_v8 }
 0x1a7   : > { %653 = vmatpush1.bf16.msra.mxu0 %v804_v7 }
 0x1aa   : > { %815 = vmatmul.mubr.msk.bf16.vlgmr.msra.gmra.mxu0 %vm627_vm4, %v293_v9 }
 0x1ac   : > { %v580_v10 = vpop.permute.xlu0 %579 }
 0x26a   : > { %v672_v11 = vpop.f32.mrf.mxu0 }
 0x26b   : > { %v673_v12 = vadd.f32 %v672_v11, %v580_v10 }
 0x26c   : > { %v674_v22 = vpop.f32.mrf.mxu0 }
 0x26d   : > { %v679_v40 = vpack.c.bf16 %v673_v12, %v673_v12  ;;  %v675_v13 = vadd.f32 %v674_v22, %v580_v10 }
 0x26e   : > { %v676_v14 = vpop.f32.mrf.mxu0 }
 0x26f   : > { %v688_v15 = vunpack.c.l.bf16 %v679_v40  ;;  %v680_v16 = vpack.c.bf16 %v675_v13, %v675_v13  ;;  %v822_v17 = vpack.c.bf16 %v675_v13, %v673_v12 }
 0x270   : > { %v677_v18 = vpop.f32.mrf.mxu0 }
 0x271   : > { %687 = vst [vmem:[%s285_s13] sm:$0xff] %v822_v17  ;;  %v689_v19 = vunpack.c.l.bf16 %v680_v16  ;;  %v694_v21 = vmul.f32 %v688_v15, %v688_v15 }
 0x273   : > { %v690_v20 = vadd.f32 %v689_v19, %v688_v15  ;;  %v695_v23 = vmul.f32 %v689_v19, %v689_v19 }
 0x275   : > { %691 = vadd.xlane.f32.xlu1 %v690_v20  ;;  %v696_v24 = vadd.f32 %v695_v23, %v694_v21 }
 0x277   : > { %697 = vadd.xlane.f32.xlu0 %v696_v24 }
 0x2fe   : > { %v692_v25 = vpop.xlane.xlu1 %691 }
 0x2ff   : > { %701 = vst.msk [vmem:[%s289_s15] sm:$0xff] %vm700_vm5, %v692_v25 }
 0x300   : > { %v698_v26 = vpop.xlane.xlu0 %697 }
 0x301   : > { %703 = vst.msk [vmem:[%s289_s15] sm:$0xff] %vm702_vm6, %v698_v26 }
 0x302 PF: > { %s18_s24 = sadd.s32 1, %s854_s24  }
 0x303   : > { %p15_p4 = scmp.ge.s32.totalorder %s18_s24, 4  }
 0x305   :  { %17 = sbr.rel (!%p15_p4) target bundleno = 1 (0x1), region = 86 }

// kernel: resunit_forward.5
= control target key start
LH: loop header
LB: loop body
LE: loop exit
PB: predicated region body
PF: predicated region fallthrough
CT: control target
= control target key end

     0   :  { %s884_s24 = smov 0   ;;  %s958_s0 = inlined_call_operand.vmem [shape: bf16[2,8,256], index: 0, kind: input, shape index: {}]   ;;  %s959_s1 = inlined_call_operand.vmem [shape: f32[2,8,256], index: 1, kind: input, shape index: {}]   ;;  %s960_s2 = inlined_call_operand.vmem [shape: f32[8,1], index: 2, kind: input, shape index: {}]   ;;  %s961_s3 = inlined_call_operand.vmem [shape: f32[8,1], index: 3, kind: input, shape index: {}]   ;;  %s962_s4 = inlined_call_operand.vmem [shape: bf16[8,72], index: 4, kind: input, shape index: {}]   ;;  %s963_s5 = inlined_call_operand.vmem [shape: f32[8,1], index: 5, kind: input, shape index: {}]   ;;  %s964_s6 = inlined_call_operand.vmem [shape: bf16[2,256], index: 6, kind: input, shape index: {}]   ;;  %s965_s7 = inlined_call_operand.vmem [shape: f32[2,8,256], index: 7, kind: output, shape index: {}]  }
   0x1 LB: > { %s762_s25 = sadd.s32 4294967295, %s826_s24   ;;  %p766_p0 = scmp.ge.s32.totalorder %s826_s24, 1  ;;  %s826_s24 = sphi %s884_s24, %s17_s24  }
   0x2   : > { %p247_p1 = scmp.lt.s32.totalorder %s826_s24, 3 }
   0x4   : > { %p248_p2 = pnand %p766_p0, %p247_p1 }
   0x5   : > { %s830_s9 = smov (!%p248_p2), 32   ;;  %s831_s10 = smov (!%p248_p2), 2  }
   0x6   : > { %251 = sbr.rel (%p248_p2) target bundleno = 626 (0x272), region = 48  ;;  %p284_p3 = scmp.lt.s32.totalorder (!%p248_p2), %s762_s25, 1 }
   0x7   : > { %s832_s15 = smov (!%p248_p2), 17   ;;  %s833_s16 = smov (!%p248_p2), 34  }
   0x8   : > { %s834_s17 = smov (!%p248_p2), 18   ;;  %s835_s18 = smov (!%p248_p2), 16  }
   0x9   : > { %s836_s19 = smov (!%p248_p2), 95   ;;  %s837_s20 = smov (!%p248_p2), 111  }
   0xa   : > { %s838_s21 = smov (!%p248_p2), 94   ;;  %s839_s22 = smov (!%p248_p2), 96  }
   0xb   : > { %vm307_vm0 = vcmask 273544   ;;  %v300_v0 = vld [vmem:[%s960_s2] sm:$0xff]  ;;  %v360_v1 = vlaneseq  ;;  %v828_v2 = vmov 0   ;;  %v829_v4 = vmov 1966171168   ;;  %s967_s25 = smov (!%p284_p3, %s762_s25), 1 }
   0xc   : > { %819 = vset.pattern.permute.xlu0 %v828_v2  ;;  %308 = vst.msk [vmem:[#allocation2 + $0x8] sm:$0xf] %vm307_vm0, %v828_v2  ;;  %v774_v3 = vld.sshfl [vmem:[%s964_s6] sm:$0x11 pattern:$0x75316420]  ;;  %680 = vmatprep.mubr.bf16.mxu0 %v828_v2  ;;  %v358_v5 = vunpack.c.l.s4 %v829_v4 }
   0xd   : > { %314 = vperm.xlu0 %819, %v300_v0   ;;  %v361_v6 = vshrl.u32 %v360_v1, 7  ;;  %v301_v7 = vld [vmem:[%s961_s3] sm:$0xff]  ;;  %v356_v8 = vcombine.high %v774_v3, %v774_v3  ;;  %vm305_vm1 = vcmask 134144   ;;  %s791_s11 = sshll.u32 %s967_s25, 3  ;;  %vm342_vm2 = vcmask 1043592   ;;  %s840_s23 = smov 110  }
   0xe   : > { %v359_v9 = vunpack.c.0.s8 %v358_v5  ;;  %306 = vst.msk [vmem:[#allocation2] sm:$0xf] %vm305_vm1, %v828_v2  ;;  %s288_s14 = scalar_lea.vmem %s958_s0, %s791_s11  ;;  %vm343_vm3 = vcmask 1047556   ;;  %vm338_vm4 = vcmask 138240   ;;  %vm559_vm6 = vcmask 277504   ;;  %s841_s26 = smov 126  }
   0xf   : > { %v376_v13 = vsub.s32 0, %v361_v6  ;;  %v309_v26 = vld [vmem:[%s288_s14] sm:$0xff]  ;;  %vm344_vm5 = vmor %vm343_vm3, %vm342_vm2  ;;  %vm520_vm7 = vcmask 261120   ;;  %vm496_vm8 = vcmask 146432   ;;  %vm433_vm9 = vcmask 15360   ;;  %s842_s27 = smov 112  }
  0x10   : > { %v362_v10 = vsub.s32 %v359_v9, %v361_v6  ;;  %v310_v27 = vunpack.c.l.bf16 %v309_v26  ;;  %v311_v28 = vunpack.c.h.bf16 %v309_v26  ;;  %vm457_vm10 = vcmask 130048   ;;  %s843_s28 = smov 127  }
  0x11   : > { %321 = vperm.xlu0 %819, %v301_v7   ;;  %vm403_vm11 = vcmask 1043456   ;;  %vm574_vm12 = vcmask 769024   ;;  %vm550_vm13 = vcmask 777216   ;;  %vm535_vm14 = vcmask 785408  }
  0x12   : > { %v363_v11 = vrot.slane %v774_v3, %v362_v10  ;;  %v370_v12 = vrot.slane %v356_v8, %v362_v10  ;;  %vm487_vm15 = vcmask 908288   ;;  %vm511_vm0 = vcmask 900096  }
  0x13   : > { %vm472_vm2 = vcmask 916480   ;;  %vm405_vm3 = vcmask 1039360  }
  0x14   : > { %v372_v14 = vpack.i.b16 %v363_v11, %v363_v11  ;;  %v379_v15 = vpack.i.b16 %v370_v12, %v370_v12  ;;  %v411_v16 = vshrl.u32 %v363_v11, 16  ;;  %v418_v17 = vshrl.u32 %v370_v12, 16  ;;  %v303_v11 = vld [vmem:[%s963_s5] sm:$0xff] }
  0x16   : > { %v377_v18 = vrot.slane %v372_v14, %v376_v13  ;;  %v384_v19 = vrot.slane %v379_v15, %v376_v13  ;;  %v412_v20 = vpack.i.b16 %v411_v16, %v411_v16  ;;  %v419_v21 = vpack.i.b16 %v418_v17, %v418_v17 }
  0x18   : > { %v901_v22 = vcombine.low %v377_v18, %v384_v19  ;;  %v417_v23 = vrot.slane %v412_v20, %v376_v13  ;;  %v424_v24 = vrot.slane %v419_v21, %v376_v13 }
  0x1a   : > { %517 = vrot.lane.b32.xlu0 %v901_v22, %s830_s9  ;;  %v776_v25 = vcombine.low %v417_v23, %v424_v24 }
  0x1e   : > { %430 = vrot.lane.b32.xlu0 %v776_v25, %s831_s10  ;;  %s792_s10 = sshll.u32 %s967_s25, 4 }
  0x1f   : > { %s293_s13 = scalar_lea.vmem %s959_s1, %s792_s10 }
  0x88   : > { %v315_v29 = vpop.permute.xlu0 %314 }
  0x89   : > { %v317_v30 = vmul.f32 %v315_v29, %v310_v27  ;;  %v318_v31 = vmul.f32 %v315_v29, %v311_v28 }
  0x8c   : > { %v322_v32 = vpop.permute.xlu0 %321 }
  0x8d   : > { %v324_v33 = vadd.f32 %v322_v32, %v317_v30  ;;  %v325_v34 = vadd.f32 %v322_v32, %v318_v31 }
  0x8f   : > { %v326_v35 = vmax.f32 %v324_v33, 0.0  ;;  %v327_v36 = vmax.f32 %v325_v34, 0.0 }
  0x90   : > { %v518_v45 = vpop.permute.xlu0 %517 }
  0x91   : > { %v794_v37 = vpack.c.bf16 %v327_v36, %v326_v35  ;;  %v519_v48 = vrot.slane %v518_v45, 4 }
  0x93   : > { %335 = vrot.lane.b32.xlu1 %v794_v37, %s832_s15  ;;  %v521_v54 = vsel %vm520_vm7, %v519_v48, %v518_v45 }
  0x94   : > { %v431_v56 = vpop.permute.xlu0 %430 }
  0x95   : > { %v432_v60 = vrot.slane %v431_v56, 4 }
  0x97   : > { %556 = vrot.lane.b32.xlu1 %v776_v25, %s833_s16  ;;  %v434_v2 = vsel %vm433_vm9, %v432_v60, %v431_v56  ;;  %s298_s16 = scalar_lea.vmem %s965_s7, %s792_s10 }
  0x9b   : > { %493 = vrot.lane.b32.xlu1 %v776_v25, %s834_s17 }
  0x9f   : > { %454 = vrot.lane.b32.xlu1 %v901_v22, %s835_s18 }
 0x105   : > { %v336_v38 = vpop.permute.xlu1 %335 }
 0x106   : > { %v337_v39 = vrot.slane %v336_v38, 4 }
 0x108   : > { %v339_v40 = vsel %vm338_vm4, %v337_v39, %v336_v38  ;;  %346 = vst.msk [vmem:[#allocation2 + $0x8] sm:$0xf] %vm305_vm1, %v337_v39  ;;  %vm448_vm1 = vcmask 1031168   ;;  %vm637_vm4 = vcmask 588800  }
 0x109   : > { %345 = vst.msk [vmem:[#allocation2] sm:$0xff] %vm344_vm5, %v339_v40  ;;  %v557_v42 = vpop.permute.xlu1 %556 }
 0x10a   : > { %v558_v44 = vrot.slane %v557_v42, 4 }
 0x10c   : > { %v560_v49 = vsel %vm559_vm6, %v558_v44, %v557_v42 }
 0x10d   : > { %v494_v50 = vpop.permute.xlu1 %493 }
 0x10e   : > { %v495_v55 = vrot.slane %v494_v50, 4 }
 0x10f   : > { %v540_v43 = vld [vmem:[#allocation2 + $0x8] sm:$0xf] }
 0x110   : > { %v917_v41 = vld [vmem:[#allocation2] sm:$0xff]  ;;  %545 = vrot.lane.b32.xlu1 %v540_v43, %s836_s19  ;;  %v555_v46 = vld [vmem:[#allocation2 + $0x8] sm:$0xf]  ;;  %v497_v61 = vsel %vm496_vm8, %v495_v55, %v494_v50 }
 0x111   : > { %543 = vrot.lane.b32.xlu0 %v917_v41, %s836_s19  ;;  %v477_v47 = vld [vmem:[#allocation2 + $0x8] sm:$0xf]  ;;  %v564_v51 = vmul.bf16 %v558_v44, %v555_v46  ;;  %v563_v53 = vmul.bf16 %v560_v49, %v917_v41  ;;  %v524_v58 = vmul.bf16 %v521_v54, %v917_v41  ;;  %v455_v62 = vpop.permute.xlu1 %454  ;;  %v500_v1 = vmul.bf16 %v917_v41, %v497_v61 }
 0x112   : > { %v516_v52 = vld [vmem:[#allocation2 + $0x8] sm:$0xf]  ;;  %v456_v3 = vrot.slane %v455_v62, 4  ;;  %v437_v5 = vmul.bf16 %v917_v41, %v434_v2 }
 0x113   : > { %v525_v57 = vmul.bf16 %v519_v48, %v516_v52  ;;  %v492_v59 = vld [vmem:[#allocation2 + $0x8] sm:$0xf] }
 0x114   : > { %482 = vrot.lane.b32.xlu1 %v477_v47, %s837_s20  ;;  %v501_v63 = vmul.bf16 %v495_v55, %v492_v59  ;;  %v410_v0 = vld [vmem:[#allocation2 + $0x8] sm:$0xf]  ;;  %v458_v6 = vsel %vm457_vm10, %v456_v3, %v455_v62 }
 0x115   : > { %480 = vrot.lane.b32.xlu0 %v917_v41, %s837_s20  ;;  %v438_v4 = vmul.bf16 %v432_v60, %v410_v0  ;;  %v453_v7 = vld [vmem:[#allocation2 + $0x8] sm:$0xf]  ;;  %v461_v9 = vmul.bf16 %v917_v41, %v458_v6 }
 0x116   : > { %v462_v8 = vmul.bf16 %v456_v3, %v453_v7  ;;  %v394_v10 = vld [vmem:[#allocation2 + $0x8] sm:$0xf] }
 0x118   : > { %569 = vrot.lane.b32.xlu1 %v564_v51, %s838_s21 }
 0x119   : > { %567 = vrot.lane.b32.xlu0 %v563_v53, %s838_s21 }
 0x11c   : > { %530 = vrot.lane.b32.xlu1 %v525_v57, %s839_s22 }
 0x11d   : > { %528 = vrot.lane.b32.xlu0 %v524_v58, %s839_s22 }
 0x120   : > { %506 = vrot.lane.b32.xlu1 %v501_v63, %s840_s23 }
 0x121   : > { %504 = vrot.lane.b32.xlu0 %v500_v1, %s840_s23 }
 0x124   : > { %443 = vrot.lane.b32.xlu1 %v438_v4, %s841_s26 }
 0x125   : > { %441 = vrot.lane.b32.xlu0 %v437_v5, %s841_s26  ;;  %v391_v5 = vmul.bf16 %v901_v22, %v917_v41 }
 0x128   : > { %467 = vrot.lane.b32.xlu1 %v462_v8, %s842_s27 }
 0x129   : > { %465 = vrot.lane.b32.xlu0 %v461_v9, %s842_s27 }
 0x12c   : > { %399 = vrot.lane.b32.xlu1 %v394_v10, %s843_s28  ;;  %v302_v10 = vld [vmem:[%s962_s4] sm:$0xf] }
 0x12d   : > { %397 = vrot.lane.b32.xlu0 %v917_v41, %s843_s28 }
 0x131   : > { %589 = vperm.xlu0 %819, %v303_v11   ;;  %v689_v11 = vld [vmem:[%s293_s13] sm:$0xff] }
 0x182   : > { %v546_v12 = vpop.permute.xlu1 %545 }
 0x183   : > { %v544_v13 = vpop.permute.xlu0 %543  ;;  %v548_v17 = vrot.slane %v546_v12, 4 }
 0x184   : > { %v547_v18 = vrot.slane %v544_v13, 4 }
 0x186   : > { %v483_v14 = vpop.permute.xlu1 %482  ;;  %v549_v25 = vsel %vm403_vm11, %v547_v18, %v548_v17 }
 0x187   : > { %v481_v15 = vpop.permute.xlu0 %480  ;;  %v485_v26 = vrot.slane %v483_v14, 4  ;;  %v551_v37 = vsel %vm550_vm13, %v544_v13, %v549_v25  ;;  %v690_v14 = vld [vmem:[%s293_s13 + $0x8] sm:$0xff] }
 0x188   : > { %v484_v30 = vrot.slane %v481_v15, 4 }
 0x18a   : > { %v570_v16 = vpop.permute.xlu1 %569  ;;  %v486_v42 = vsel %vm403_vm11, %v484_v30, %v485_v26 }
 0x18b   : > { %v572_v19 = vrot.slane %v570_v16, 4  ;;  %v568_v20 = vpop.permute.xlu0 %567  ;;  %v488_v48 = vsel %vm487_vm15, %v481_v15, %v486_v42 }
 0x18c   : > { %v571_v21 = vrot.slane %v568_v20, 4 }
 0x18e   : > { %v573_v23 = vsel %vm403_vm11, %v571_v21, %v572_v19  ;;  %v531_v24 = vpop.permute.xlu1 %530 }
 0x18f   : > { %v575_v27 = vsel %vm574_vm12, %v568_v20, %v573_v23  ;;  %v533_v28 = vrot.slane %v531_v24, 4  ;;  %v529_v29 = vpop.permute.xlu0 %528 }
 0x190   : > { %v532_v31 = vrot.slane %v529_v29, 4  ;;  %v786_v32 = vcombine.high %v575_v27, %v575_v27  ;;  %v785_v33 = vcombine.low %v575_v27, %v575_v27 }
 0x192   : > { %v534_v34 = vsel %vm403_vm11, %v532_v31, %v533_v28  ;;  %787 = vmatprep.subr.msk.bf16.mxu0 %vm403_vm11, %v786_v32  ;;  %v507_v35 = vpop.permute.xlu1 %506  ;;  %v643_v36 = vsel %vm403_vm11, %v785_v33, 0 }
 0x193   : > { %v536_v38 = vsel %vm535_vm14, %v529_v29, %v534_v34  ;;  %v509_v39 = vrot.slane %v507_v35, 4  ;;  %v505_v40 = vpop.permute.xlu0 %504  ;;  %655 = vmatpush1.bf16.msra.mxu0 %v643_v36 }
 0x194   : > { %v783_v43 = vcombine.low %v536_v38, %v551_v37  ;;  %v784_v44 = vcombine.high %v536_v38, %v551_v37  ;;  %v508_v45 = vrot.slane %v505_v40, 4 }
 0x196   : > { %v510_v46 = vsel %vm403_vm11, %v508_v45, %v509_v39  ;;  %656 = vmatprep.subr.bf16.mxu0 %v784_v44  ;;  %v444_v47 = vpop.permute.xlu1 %443 }
 0x197   : > { %v512_v49 = vsel %vm511_vm0, %v505_v40, %v510_v46  ;;  %v442_v50 = vpop.permute.xlu0 %441  ;;  %657 = vmatpush1.bf16.msra.mxu0 %v783_v43  ;;  %v446_v53 = vrot.slane %v444_v47, 4 }
 0x198   : > { %v781_v51 = vcombine.low %v488_v48, %v512_v49  ;;  %v782_v52 = vcombine.high %v488_v48, %v512_v49  ;;  %v445_v54 = vrot.slane %v442_v50, 4 }
 0x19a   : > { %658 = vmatprep.subr.bf16.mxu0 %v782_v52  ;;  %v468_v55 = vpop.permute.xlu1 %467  ;;  %v447_v58 = vsel %vm403_vm11, %v445_v54, %v446_v53 }
 0x19b   : > { %v470_v56 = vrot.slane %v468_v55, 4  ;;  %v466_v57 = vpop.permute.xlu0 %465  ;;  %659 = vmatpush1.bf16.msra.mxu0 %v781_v51  ;;  %v449_v62 = vsel %vm448_vm1, %v442_v50, %v447_v58 }
 0x19c   : > { %v469_v59 = vrot.slane %v466_v57, 4 }
 0x19e   : > { %v471_v60 = vsel %vm403_vm11, %v469_v59, %v470_v56  ;;  %v400_v61 = vpop.permute.xlu1 %399 }
 0x19f   : > { %v473_v63 = vsel %vm472_vm2, %v466_v57, %v471_v60  ;;  %v402_v0 = vrot.slane %v400_v61, 4  ;;  %v398_v1 = vpop.permute.xlu0 %397 }
 0x1a0   : > { %v779_v2 = vcombine.low %v449_v62, %v473_v63  ;;  %v780_v3 = vcombine.high %v449_v62, %v473_v63  ;;  %v401_v4 = vrot.slane %v398_v1, 4 }
 0x1a2   : > { %v404_v6 = vsel %vm403_vm11, %v401_v4, %v402_v0  ;;  %660 = vmatprep.subr.bf16.mxu0 %v780_v3 }
 0x1a3   : > { %v406_v7 = vsel %vm405_vm3, %v398_v1, %v404_v6  ;;  %661 = vmatpush1.bf16.msra.mxu0 %v779_v2 }
 0x1a4   : > { %v777_v8 = vcombine.low %v391_v5, %v406_v7  ;;  %v778_v9 = vcombine.high %v391_v5, %v406_v7 }
 0x1a6   : > { %662 = vmatprep.subr.bf16.mxu0 %v778_v9 }
 0x1a7   : > { %663 = vmatpush1.bf16.msra.mxu0 %v777_v8 }
 0x1aa   : > { %788 = vmatmul.mubr.msk.bf16.vlgmr.msra.gmra.mxu0 %vm637_vm4, %v302_v10 }
 0x1ac   : > { %v590_v22 = vpop.permute.xlu0 %589 }
 0x26a   : > { %v682_v41 = vpop.f32.mrf.mxu0 }
 0x26b   : > { %v683_v12 = vadd.f32 %v682_v41, %v590_v22 }
 0x26c   : > { %v684_v13 = vpop.f32.mrf.mxu0 }
 0x26d   : > { %v691_v15 = vadd.f32 %v689_v11, %v683_v12  ;;  %v685_v16 = vadd.f32 %v684_v13, %v590_v22 }
 0x26e   : > { %v686_v17 = vpop.f32.mrf.mxu0 }
 0x26f   : > { %693 = vst [vmem:[%s298_s16] sm:$0xff] %v691_v15  ;;  %v692_v18 = vadd.f32 %v690_v14, %v685_v16 }
 0x270   : > { %v687_v19 = vpop.f32.mrf.mxu0 }
 0x271   : > { %694 = vst [vmem:[%s298_s16 + $0x8] sm:$0xff] %v692_v18 }
 0x272 PF: > { %s17_s24 = sadd.s32 1, %s826_s24  }
 0x273   : > { %p14_p4 = scmp.ge.s32.totalorder %s17_s24, 4  }
 0x275   :  { %16 = sbr.rel (!%p14_p4) target bundleno = 1 (0x1), region = 81 }

</bundles_post_ra>
